<compile_context>
chip_gen: v5e
topology: v5e:2x2
jax: 0.10.0
libtpu: 0.0.40
codegen_flags: <defaults>
</compile_context>

<pallas_src>
import jax
import jax.numpy as jnp
from jax import lax
from jax.experimental import pallas as pl
from jax.experimental.pallas import tpu as pltpu


# Order of per-round parameters as passed to the kernel (after h, uv_row, uv_col, edge_vec).
_PARAM_ORDER = (
    "wfu", "wfv", "wfe", "bf",        # forward message Linear, split by input chunk
    "wru", "wrv", "wre", "br",        # reverse message Linear, split by input chunk
    "wir", "whr", "bgr",              # GRU reset gate   (b_ir + b_hr folded into bgr)
    "wiz", "whz", "bgz",              # GRU update gate  (b_iz + b_hz folded into bgz)
    "win", "bin", "whn", "bhn",       # GRU candidate    (b_in, b_hn kept separate)
)
# Message-linear weights are pure MXU operands -> pre-cast to bf16 in the wrapper.
_MSG_W = ("wfu", "wfv", "wfe", "wru", "wrv", "wre")


def _propagator_kernel(
    h_ref, uvr_ref, uvc_ref, e_ref,
    wfu_ref, wfv_ref, wfe_ref, bf_ref,
    wru_ref, wrv_ref, wre_ref, br_ref,
    wir_ref, whr_ref, bgr_ref,
    wiz_ref, whz_ref, bgz_ref,
    win_ref, bin_ref, whn_ref, bhn_ref,
    out_ref,
    agg_ref, h_scr, hwfu_scr, hwfv_scr, hwru_scr, hwrv_scr,
):
    r = pl.program_id(0)               # round (outer, carries h)
    k = pl.program_id(1)               # edge tile (inner, reduction)
    n_nodes = h_ref.shape[0]
    te = e_ref.shape[0]

    # --- initialize the carried hidden state once, at the very first grid step ---
    @pl.when(jnp.logical_and(r == 0, k == 0))
    def _():
        h_scr[...] = h_ref[...].astype(jnp.float32)

    # --- per-round init: zero the aggregate and hoist the node-side message linears ---
    #   h[u] @ Wfu == (onehot_u @ h) @ Wfu == onehot_u @ (h @ Wfu); compute h @ W* once.
    @pl.when(k == 0)
    def _():
        agg_ref[...] = jnp.zeros_like(agg_ref)
        h_bf = h_scr[...].astype(jnp.bfloat16)
        hwfu_scr[...] = jnp.dot(h_bf, wfu_ref[...],
                                preferred_element_type=jnp.float32).astype(jnp.bfloat16)
        hwfv_scr[...] = jnp.dot(h_bf, wfv_ref[...],
                                preferred_element_type=jnp.float32).astype(jnp.bfloat16)
        hwru_scr[...] = jnp.dot(h_bf, wru_ref[...],
                                preferred_element_type=jnp.float32).astype(jnp.bfloat16)
        hwrv_scr[...] = jnp.dot(h_bf, wrv_ref[...],
                                preferred_element_type=jnp.float32).astype(jnp.bfloat16)

    # --- per-edge-tile work (every grid step) ---
    u_col = uvc_ref[:, 0:1]            # (TE, 1) int32 source node ids (-1 = pad)
    v_col = uvc_ref[:, 1:2]            # (TE, 1)
    u_row = uvr_ref[0:1, :]            # (1, TE) lane-dense copy of the same indices
    v_row = uvr_ref[1:2, :]            # (1, TE)
    ev = e_ref[...]                    # (TE, S) bf16

    # Both one-hot orientations built directly with iota compares (VPU only, no XLU transpose).
    iota_en = lax.broadcasted_iota(jnp.int32, (te, n_nodes), 1)
    iota_ne = lax.broadcasted_iota(jnp.int32, (n_nodes, te), 0)
    gat_u = (iota_en == u_col).astype(jnp.bfloat16)    # (TE, N)   gat_u[e, n] = (u[e] == n)
    gat_v = (iota_en == v_col).astype(jnp.bfloat16)    # (TE, N)
    gat_ut = (iota_ne == u_row).astype(jnp.bfloat16)   # (N, TE)   transposed scatter one-hot
    gat_vt = (iota_ne == v_row).astype(jnp.bfloat16)   # (N, TE)

    # Messages with the concat(h_u, h_v, edge_vec) linear folded into hoisted hW* chunks.
    m_f = (jnp.dot(gat_u, hwfu_scr[...], preferred_element_type=jnp.float32)
           + jnp.dot(gat_v, hwfv_scr[...], preferred_element_type=jnp.float32)
           + jnp.dot(ev, wfe_ref[...], preferred_element_type=jnp.float32)
           + bf_ref[...])                                          # (TE, 2D) f32
    m_r = (jnp.dot(gat_u, hwru_scr[...], preferred_element_type=jnp.float32)
           + jnp.dot(gat_v, hwrv_scr[...], preferred_element_type=jnp.float32)
           + jnp.dot(ev, wre_ref[...], preferred_element_type=jnp.float32)
           + br_ref[...])                                          # (TE, 2D) f32

    # Scatter-add into per-node aggregate (plain matmuls, no dim-0 contraction):
    #   incoming edges (node == v) receive forward messages,
    #   outgoing edges (node == u) receive reverse messages.
    # NOTE: padded edges (-1) have all-zero columns in gat_*t, so their bias-only rows vanish.
    agg_ref[...] += (
        jnp.dot(gat_vt, m_f.astype(jnp.bfloat16), preferred_element_type=jnp.float32)
        + jnp.dot(gat_ut, m_r.astype(jnp.bfloat16), preferred_element_type=jnp.float32)
    )                                                               # (N, 2D) f32

    # --- finalize the round: fused GRUCell on the last edge tile (must stay traced AFTER
    #     the accumulation above — both pl.when blocks fire in the same body when kt == 1). ---
    @pl.when(k == pl.num_programs(1) - 1)
    def _():
        h = h_scr[...]                                              # (N, D) f32
        agg = agg_ref[...]                                          # (N, 2D) f32
        r_gate = jax.nn.sigmoid(
            jnp.dot(agg, wir_ref[...], preferred_element_type=jnp.float32)
            + jnp.dot(h, whr_ref[...], preferred_element_type=jnp.float32)
            + bgr_ref[...])
        z_gate = jax.nn.sigmoid(
            jnp.dot(agg, wiz_ref[...], preferred_element_type=jnp.float32)
            + jnp.dot(h, whz_ref[...], preferred_element_type=jnp.float32)
            + bgz_ref[...])
        n_gate = jnp.tanh(
            jnp.dot(agg, win_ref[...], preferred_element_type=jnp.float32)
            + bin_ref[...]
            + r_gate * (jnp.dot(h, whn_ref[...], preferred_element_type=jnp.float32)
                        + bhn_ref[...]))
        h_new = (1.0 - z_gate) * n_gate + z_gate * h
        h_scr[...] = h_new                                          # carry into next round
        out_ref[...] = h_new.astype(out_ref.dtype)                  # final HBM writeback only


def propagator_forward(node_vectors, u_indices, v_indices, edge_vectors, params,
                       *, edge_tile=128):
    """Runs rounds_of_propagation = len(params) rounds in ONE fused pallas_call.
    node_vectors: (N, D) f32; u_indices/v_indices: (E,) int; edge_vectors: (E, S).
    edge_tile: 128 (v5e, cross-chip safe default) or 256 (v6e/v7x), multiple of 128."""
    n, d = node_vectors.shape
    e = int(u_indices.shape[0])
    rounds = len(params)
    if n == 0 or e == 0 or rounds == 0:
        # PyTorch forward early-returns when the graph has no nodes or edges.
        return node_vectors
    s = edge_vectors.shape[1]
    assert edge_tile % 128 == 0, "edge_tile must be a multiple of 128 (lane-dense row layout)"

    # Pad edges to a multiple of the edge tile; padded edges use index -1 (ignored).
    e_pad = pl.cdiv(e, edge_tile) * edge_tile
    uv_col = jnp.full((e_pad, 2), -1, jnp.int32)
    uv_col = uv_col.at[:e, 0].set(u_indices.astype(jnp.int32))
    uv_col = uv_col.at[:e, 1].set(v_indices.astype(jnp.int32))
    uv_row = uv_col.T                                   # (2, E_pad) lane-dense layout
    e_p = jnp.zeros((e_pad, s), jnp.bfloat16).at[:e].set(edge_vectors.astype(jnp.bfloat16))

    # Stack per-round params on a leading R axis; pure-MXU message weights pre-cast to bf16.
    stacked = {}
    for name in _PARAM_ORDER:
        w = jnp.stack([p[name] for p in params], axis=0)
        if name in _MSG_W:
            w = w.astype(jnp.bfloat16)
        stacked[name] = w

    kt = e_pad // edge_tile
    grid = (rounds, kt)

    in_specs = [
        pl.BlockSpec((n, d), lambda r, k: (0, 0)),                # node vectors (resident)
        pl.BlockSpec((2, edge_tile), lambda r, k: (0, k)),        # u/v indices, row layout
        pl.BlockSpec((edge_tile, 2), lambda r, k: (k, 0)),        # u/v indices, column layout
        pl.BlockSpec((edge_tile, s), lambda r, k: (k, 0)),        # edge vectors tile
    ]
    for name in _PARAM_ORDER:                                     # per-round weight blocks
        shp = stacked[name].shape                                 # (R, a, b)
        in_specs.append(pl.BlockSpec((None,) + shp[1:], lambda r, k: (r, 0, 0)))

    call = pl.pallas_call(
        _propagator_kernel,
        out_shape=jax.ShapeDtypeStruct((n, d), node_vectors.dtype),
        grid_spec=pltpu.PrefetchScalarGridSpec(
            num_scalar_prefetch=0,
            grid=grid,
            in_specs=in_specs,
            out_specs=pl.BlockSpec((n, d), lambda r, k: (0, 0)),
            scratch_shapes=[
                pltpu.VMEM((n, 2 * d), jnp.float32),      # aggregate accumulator
                pltpu.VMEM((n, d), jnp.float32),          # carried hidden state h
                pltpu.VMEM((n, 2 * d), jnp.bfloat16),     # hoisted h @ Wfu
                pltpu.VMEM((n, 2 * d), jnp.bfloat16),     # hoisted h @ Wfv
                pltpu.VMEM((n, 2 * d), jnp.bfloat16),     # hoisted h @ Wru
                pltpu.VMEM((n, 2 * d), jnp.bfloat16),     # hoisted h @ Wrv
            ],
        ),
        compiler_params=pltpu.CompilerParams(
            # round axis carries h; edge axis is a reduction -> both sequential.
            dimension_semantics=("arbitrary", "arbitrary"),
        ),
    )
    return call(node_vectors, uv_row, uv_col, e_p,
                *[stacked[name] for name in _PARAM_ORDER])


def make_params(key, rounds, d, s):
    shapes = {
        "wfu": (d, 2 * d), "wfv": (d, 2 * d), "wfe": (s, 2 * d), "bf": (1, 2 * d),
        "wru": (d, 2 * d), "wrv": (d, 2 * d), "wre": (s, 2 * d), "br": (1, 2 * d),
        "wir": (2 * d, d), "whr": (d, d), "bgr": (1, d),
        "wiz": (2 * d, d), "whz": (d, d), "bgz": (1, d),
        "win": (2 * d, d), "bin": (1, d), "whn": (d, d), "bhn": (1, d),
    }
    params = []
    for _ in range(rounds):
        key, sub = jax.random.split(key)
        ks = jax.random.split(sub, len(_PARAM_ORDER))
        params.append({name: 0.1 * jax.random.normal(kk, shapes[name], jnp.float32)
                       for name, kk in zip(_PARAM_ORDER, ks)})
    return params


def _reference_propagator(h, u_idx, v_idx, e_vec, params):
    """Pure-JAX reference mirroring the PyTorch Propagator.forward math."""
    h = h.astype(jnp.float32)
    for p in params:
        h_u = h[u_idx]
        h_v = h[v_idx]
        msg = jnp.concatenate([h_u, h_v, e_vec.astype(jnp.float32)], axis=1)
        w_ef = jnp.concatenate([p["wfu"], p["wfv"], p["wfe"]], axis=0)
        w_er = jnp.concatenate([p["wru"], p["wrv"], p["wre"]], axis=0)
        m_f = msg @ w_ef + p["bf"]
        m_r = msg @ w_er + p["br"]
        agg = jnp.zeros((h.shape[0], m_f.shape[1]), jnp.float32)
        agg = agg.at[v_idx].add(m_f)   # incoming edges -> forward messages
        agg = agg.at[u_idx].add(m_r)   # outgoing edges -> reverse messages
        r = jax.nn.sigmoid(agg @ p["wir"] + h @ p["whr"] + p["bgr"])
        z = jax.nn.sigmoid(agg @ p["wiz"] + h @ p["whz"] + p["bgz"])
        ng = jnp.tanh(agg @ p["win"] + p["bin"] + r * (h @ p["whn"] + p["bhn"]))
        h = (1.0 - z) * ng + z * h
    return h


if __name__ == "__main__":
    key = jax.random.PRNGKey(0)
    k_h, k_u, k_v, k_e, k_w = jax.random.split(key, 5)

    N_NODES = 8          # nodes in the graph
    NODE_SIZE = 64       # GraphNetConfig.node_size
    EDGE_SIZE = 4        # GraphNetConfig.edge_size (= num_edge_types)
    N_EDGES = 16
    ROUNDS = 3           # GraphNetConfig.rounds_of_propagation

    node_vectors = 0.1 * jax.random.normal(k_h, (N_NODES, NODE_SIZE), jnp.float32)
    u_indices = jax.random.randint(k_u, (N_EDGES,), 0, N_NODES, jnp.int32)
    v_indices = jax.random.randint(k_v, (N_EDGES,), 0, N_NODES, jnp.int32)
    edge_vectors = jax.random.normal(k_e, (N_EDGES, EDGE_SIZE), jnp.float32)

    params = make_params(k_w, ROUNDS, NODE_SIZE, EDGE_SIZE)

    h_out = propagator_forward(node_vectors, u_indices, v_indices, edge_vectors,
                               params, edge_tile=128)
    h_out = jax.block_until_ready(h_out)

    h_ref = _reference_propagator(node_vectors, u_indices, v_indices, edge_vectors, params)
    max_err = float(jnp.max(jnp.abs(h_out - h_ref)))
    # Tolerance absorbs bf16 MXU operands in the kernel and TPU default-precision matmuls
    # in the pure-JAX reference.
    assert jnp.allclose(h_out, h_ref, atol=3e-2, rtol=3e-2), ("mismatch", max_err)

    print("KERNEL_OK")
</pallas_src>

<mosaic_0001>
module attributes {stable_mosaic.version = 11 : i64} {
  func.func @_propagator_kernel(%arg0: i32, %arg1: i32, %arg2: memref<8x64xf32, #tpu.memory_space<vmem>>, %arg3: memref<2x128xi32, #tpu.memory_space<vmem>>, %arg4: memref<128x2xi32, #tpu.memory_space<vmem>>, %arg5: memref<128x4xbf16, #tpu.memory_space<vmem>>, %arg6: memref<1x64x128xbf16, #tpu.memory_space<vmem>>, %arg7: memref<1x64x128xbf16, #tpu.memory_space<vmem>>, %arg8: memref<1x4x128xbf16, #tpu.memory_space<vmem>>, %arg9: memref<1x1x128xf32, #tpu.memory_space<vmem>>, %arg10: memref<1x64x128xbf16, #tpu.memory_space<vmem>>, %arg11: memref<1x64x128xbf16, #tpu.memory_space<vmem>>, %arg12: memref<1x4x128xbf16, #tpu.memory_space<vmem>>, %arg13: memref<1x1x128xf32, #tpu.memory_space<vmem>>, %arg14: memref<1x128x64xf32, #tpu.memory_space<vmem>>, %arg15: memref<1x64x64xf32, #tpu.memory_space<vmem>>, %arg16: memref<1x1x64xf32, #tpu.memory_space<vmem>>, %arg17: memref<1x128x64xf32, #tpu.memory_space<vmem>>, %arg18: memref<1x64x64xf32, #tpu.memory_space<vmem>>, %arg19: memref<1x1x64xf32, #tpu.memory_space<vmem>>, %arg20: memref<1x128x64xf32, #tpu.memory_space<vmem>>, %arg21: memref<1x1x64xf32, #tpu.memory_space<vmem>>, %arg22: memref<1x64x64xf32, #tpu.memory_space<vmem>>, %arg23: memref<1x1x64xf32, #tpu.memory_space<vmem>>, %arg24: memref<8x64xf32, #tpu.memory_space<vmem>>, %arg25: memref<8x128xf32, #tpu.memory_space<vmem>>, %arg26: memref<8x64xf32, #tpu.memory_space<vmem>>, %arg27: memref<8x128xbf16, #tpu.memory_space<vmem>>, %arg28: memref<8x128xbf16, #tpu.memory_space<vmem>>, %arg29: memref<8x128xbf16, #tpu.memory_space<vmem>>, %arg30: memref<8x128xbf16, #tpu.memory_space<vmem>>) attributes {dimension_semantics = [#tpu.dimension_semantics<arbitrary>, #tpu.dimension_semantics<arbitrary>], iteration_bounds = array<i64: 3, 1>, scalar_prefetch = 0 : i64, scratch_operands = 6 : i64, tpu.core_type = #tpu.core_type<tc>, window_params = [{pipeline_mode = #tpu.pipeline_mode<synchronous>, transform_indices = @transform_0, window_bounds = array<i64: 8, 64>}, {transform_indices = @transform_1, window_bounds = array<i64: 2, 128>}, {transform_indices = @transform_2, window_bounds = array<i64: 128, 2>}, {transform_indices = @transform_3, window_bounds = array<i64: 128, 4>}, {transform_indices = @transform_4, window_bounds = array<i64: 1, 64, 128>}, {transform_indices = @transform_5, window_bounds = array<i64: 1, 64, 128>}, {transform_indices = @transform_6, window_bounds = array<i64: 1, 4, 128>}, {transform_indices = @transform_7, window_bounds = array<i64: 1, 1, 128>}, {transform_indices = @transform_8, window_bounds = array<i64: 1, 64, 128>}, {transform_indices = @transform_9, window_bounds = array<i64: 1, 64, 128>}, {transform_indices = @transform_10, window_bounds = array<i64: 1, 4, 128>}, {transform_indices = @transform_11, window_bounds = array<i64: 1, 1, 128>}, {transform_indices = @transform_12, window_bounds = array<i64: 1, 128, 64>}, {transform_indices = @transform_13, window_bounds = array<i64: 1, 64, 64>}, {transform_indices = @transform_14, window_bounds = array<i64: 1, 1, 64>}, {transform_indices = @transform_15, window_bounds = array<i64: 1, 128, 64>}, {transform_indices = @transform_16, window_bounds = array<i64: 1, 64, 64>}, {transform_indices = @transform_17, window_bounds = array<i64: 1, 1, 64>}, {transform_indices = @transform_18, window_bounds = array<i64: 1, 128, 64>}, {transform_indices = @transform_19, window_bounds = array<i64: 1, 1, 64>}, {transform_indices = @transform_20, window_bounds = array<i64: 1, 64, 64>}, {transform_indices = @transform_21, window_bounds = array<i64: 1, 1, 64>}, {pipeline_mode = #tpu.pipeline_mode<synchronous>, transform_indices = @transform_22, window_bounds = array<i64: 8, 64>}]} {
    %c0_i32 = arith.constant 0 : i32
    %0 = arith.cmpi eq, %arg0, %c0_i32 : i32
    %c0_i32_0 = arith.constant 0 : i32
    %1 = arith.cmpi eq, %arg1, %c0_i32_0 : i32
    %2 = arith.andi %0, %1 : i1
    %3 = arith.extui %2 : i1 to i32
    %c0_i32_1 = arith.constant 0 : i32
    %4 = arith.cmpi ne, %3, %c0_i32_1 : i32
    scf.if %4 {
      %c0_45 = arith.constant 0 : index
      %c0_46 = arith.constant 0 : index
      %72 = vector.load %arg2[%c0_45, %c0_46] : memref<8x64xf32, #tpu.memory_space<vmem>>, vector<8x64xf32>
      %c0_47 = arith.constant 0 : index
      %c0_48 = arith.constant 0 : index
      %73 = vector.load %arg26[%c0_47, %c0_48] : memref<8x64xf32, #tpu.memory_space<vmem>>, vector<8x64xf32>
      tpu.vector_store %arg26[%c0_47, %c0_48], %72 {strides = array<i32>} : memref<8x64xf32, #tpu.memory_space<vmem>>, vector<8x64xf32>,
    } else {
    }
    %c0_i32_2 = arith.constant 0 : i32
    %5 = arith.cmpi eq, %arg1, %c0_i32_2 : i32
    %6 = arith.extui %5 : i1 to i32
    %c0_i32_3 = arith.constant 0 : i32
    %7 = arith.cmpi ne, %6, %c0_i32_3 : i32
    scf.if %7 {
      %cst_45 = arith.constant 0.000000e+00 : f32
      %72 = vector.broadcast %cst_45 : f32 to vector<8x128xf32>
      %c0_46 = arith.constant 0 : index
      %c0_47 = arith.constant 0 : index
      %73 = vector.load %arg25[%c0_46, %c0_47] : memref<8x128xf32, #tpu.memory_space<vmem>>, vector<8x128xf32>
      tpu.vector_store %arg25[%c0_46, %c0_47], %72 {strides = array<i32>} : memref<8x128xf32, #tpu.memory_space<vmem>>, vector<8x128xf32>,
      %c0_48 = arith.constant 0 : index
      %c0_49 = arith.constant 0 : index
      %74 = vector.load %arg26[%c0_48, %c0_49] : memref<8x64xf32, #tpu.memory_space<vmem>>, vector<8x64xf32>
      %75 = arith.truncf %74 : vector<8x64xf32> to vector<8x64xbf16>
      %c0_50 = arith.constant 0 : index
      %c0_51 = arith.constant 0 : index
      %c0_52 = arith.constant 0 : index
      %76 = vector.load %arg6[%c0_50, %c0_51, %c0_52] : memref<1x64x128xbf16, #tpu.memory_space<vmem>>, vector<1x64x128xbf16>
      %77 = vector.shape_cast %76 : vector<1x64x128xbf16> to vector<64x128xbf16>
      %cst_53 = arith.constant dense<0.000000e+00> : vector<8x128xf32>
      %78 = tpu.matmul %75, %77, %cst_53 {dimension_numbers = #tpu.dot_dimension_numbers<[1], [0], [0], [1], [0, 0, 1, 1], [], []>} : vector<8x64xbf16>, vector<64x128xbf16>, vector<8x128xf32> -> vector<8x128xf32>
      %79 = arith.truncf %78 : vector<8x128xf32> to vector<8x128xbf16>
      %c0_54 = arith.constant 0 : index
      %c0_55 = arith.constant 0 : index
      %80 = vector.load %arg27[%c0_54, %c0_55] : memref<8x128xbf16, #tpu.memory_space<vmem>>, vector<8x128xbf16>
      tpu.vector_store %arg27[%c0_54, %c0_55], %79 {strides = array<i32>} : memref<8x128xbf16, #tpu.memory_space<vmem>>, vector<8x128xbf16>,
      %c0_56 = arith.constant 0 : index
      %c0_57 = arith.constant 0 : index
      %c0_58 = arith.constant 0 : index
      %81 = vector.load %arg7[%c0_56, %c0_57, %c0_58] : memref<1x64x128xbf16, #tpu.memory_space<vmem>>, vector<1x64x128xbf16>
      %82 = vector.shape_cast %81 : vector<1x64x128xbf16> to vector<64x128xbf16>
      %cst_59 = arith.constant dense<0.000000e+00> : vector<8x128xf32>
      %83 = tpu.matmul %75, %82, %cst_59 {dimension_numbers = #tpu.dot_dimension_numbers<[1], [0], [0], [1], [0, 0, 1, 1], [], []>} : vector<8x64xbf16>, vector<64x128xbf16>, vector<8x128xf32> -> vector<8x128xf32>
      %84 = arith.truncf %83 : vector<8x128xf32> to vector<8x128xbf16>
      %c0_60 = arith.constant 0 : index
      %c0_61 = arith.constant 0 : index
      %85 = vector.load %arg28[%c0_60, %c0_61] : memref<8x128xbf16, #tpu.memory_space<vmem>>, vector<8x128xbf16>
      tpu.vector_store %arg28[%c0_60, %c0_61], %84 {strides = array<i32>} : memref<8x128xbf16, #tpu.memory_space<vmem>>, vector<8x128xbf16>,
      %c0_62 = arith.constant 0 : index
      %c0_63 = arith.constant 0 : index
      %c0_64 = arith.constant 0 : index
      %86 = vector.load %arg10[%c0_62, %c0_63, %c0_64] : memref<1x64x128xbf16, #tpu.memory_space<vmem>>, vector<1x64x128xbf16>
      %87 = vector.shape_cast %86 : vector<1x64x128xbf16> to vector<64x128xbf16>
      %cst_65 = arith.constant dense<0.000000e+00> : vector<8x128xf32>
      %88 = tpu.matmul %75, %87, %cst_65 {dimension_numbers = #tpu.dot_dimension_numbers<[1], [0], [0], [1], [0, 0, 1, 1], [], []>} : vector<8x64xbf16>, vector<64x128xbf16>, vector<8x128xf32> -> vector<8x128xf32>
      %89 = arith.truncf %88 : vector<8x128xf32> to vector<8x128xbf16>
      %c0_66 = arith.constant 0 : index
      %c0_67 = arith.constant 0 : index
      %90 = vector.load %arg29[%c0_66, %c0_67] : memref<8x128xbf16, #tpu.memory_space<vmem>>, vector<8x128xbf16>
      tpu.vector_store %arg29[%c0_66, %c0_67], %89 {strides = array<i32>} : memref<8x128xbf16, #tpu.memory_space<vmem>>, vector<8x128xbf16>,
      %c0_68 = arith.constant 0 : index
      %c0_69 = arith.constant 0 : index
      %c0_70 = arith.constant 0 : index
      %91 = vector.load %arg11[%c0_68, %c0_69, %c0_70] : memref<1x64x128xbf16, #tpu.memory_space<vmem>>, vector<1x64x128xbf16>
      %92 = vector.shape_cast %91 : vector<1x64x128xbf16> to vector<64x128xbf16>
      %cst_71 = arith.constant dense<0.000000e+00> : vector<8x128xf32>
      %93 = tpu.matmul %75, %92, %cst_71 {dimension_numbers = #tpu.dot_dimension_numbers<[1], [0], [0], [1], [0, 0, 1, 1], [], []>} : vector<8x64xbf16>, vector<64x128xbf16>, vector<8x128xf32> -> vector<8x128xf32>
      %94 = arith.truncf %93 : vector<8x128xf32> to vector<8x128xbf16>
      %c0_72 = arith.constant 0 : index
      %c0_73 = arith.constant 0 : index
      %95 = vector.load %arg30[%c0_72, %c0_73] : memref<8x128xbf16, #tpu.memory_space<vmem>>, vector<8x128xbf16>
      tpu.vector_store %arg30[%c0_72, %c0_73], %94 {strides = array<i32>} : memref<8x128xbf16, #tpu.memory_space<vmem>>, vector<8x128xbf16>,
    } else {
    }
    %c0 = arith.constant 0 : index
    %c0_4 = arith.constant 0 : index
    %8 = vector.load %arg4[%c0, %c0_4] : memref<128x2xi32, #tpu.memory_space<vmem>>, vector<128x1xi32>
    %c0_5 = arith.constant 0 : index
    %c1 = arith.constant 1 : index
    %9 = vector.load %arg4[%c0_5, %c1] : memref<128x2xi32, #tpu.memory_space<vmem>>, vector<128x1xi32>
    %c0_6 = arith.constant 0 : index
    %c0_7 = arith.constant 0 : index
    %10 = vector.load %arg3[%c0_6, %c0_7] : memref<2x128xi32, #tpu.memory_space<vmem>>, vector<1x128xi32>
    %c1_8 = arith.constant 1 : index
    %c0_9 = arith.constant 0 : index
    %11 = vector.load %arg3[%c1_8, %c0_9] : memref<2x128xi32, #tpu.memory_space<vmem>>, vector<1x128xi32>
    %c0_10 = arith.constant 0 : index
    %c0_11 = arith.constant 0 : index
    %12 = vector.load %arg5[%c0_10, %c0_11] : memref<128x4xbf16, #tpu.memory_space<vmem>>, vector<128x4xbf16>
    %13 = tpu.iota {dimensions = array<i32: 1>} : vector<128x8xi32>
    %14 = tpu.iota {dimensions = array<i32: 0>} : vector<8x128xi32>
    %15 = vector.broadcast %8 : vector<128x1xi32> to vector<128x8xi32>
    %16 = arith.cmpi eq, %13, %15 : vector<128x8xi32>
    %17 = arith.extui %16 : vector<128x8xi1> to vector<128x8xi32>
    %18 = arith.sitofp %17 : vector<128x8xi32> to vector<128x8xf32>
    %19 = arith.truncf %18 : vector<128x8xf32> to vector<128x8xbf16>
    %20 = vector.broadcast %9 : vector<128x1xi32> to vector<128x8xi32>
    %21 = arith.cmpi eq, %13, %20 : vector<128x8xi32>
    %22 = arith.extui %21 : vector<128x8xi1> to vector<128x8xi32>
    %23 = arith.sitofp %22 : vector<128x8xi32> to vector<128x8xf32>
    %24 = arith.truncf %23 : vector<128x8xf32> to vector<128x8xbf16>
    %25 = vector.broadcast %10 : vector<1x128xi32> to vector<8x128xi32>
    %26 = arith.cmpi eq, %14, %25 : vector<8x128xi32>
    %27 = arith.extui %26 : vector<8x128xi1> to vector<8x128xi32>
    %28 = arith.sitofp %27 : vector<8x128xi32> to vector<8x128xf32>
    %29 = arith.truncf %28 : vector<8x128xf32> to vector<8x128xbf16>
    %30 = vector.broadcast %11 : vector<1x128xi32> to vector<8x128xi32>
    %31 = arith.cmpi eq, %14, %30 : vector<8x128xi32>
    %32 = arith.extui %31 : vector<8x128xi1> to vector<8x128xi32>
    %33 = arith.sitofp %32 : vector<8x128xi32> to vector<8x128xf32>
    %34 = arith.truncf %33 : vector<8x128xf32> to vector<8x128xbf16>
    %c0_12 = arith.constant 0 : index
    %c0_13 = arith.constant 0 : index
    %35 = vector.load %arg27[%c0_12, %c0_13] : memref<8x128xbf16, #tpu.memory_space<vmem>>, vector<8x128xbf16>
    %cst = arith.constant dense<0.000000e+00> : vector<128x128xf32>
    %36 = tpu.matmul %19, %35, %cst {dimension_numbers = #tpu.dot_dimension_numbers<[1], [0], [0], [1], [0, 0, 1, 1], [], []>} : vector<128x8xbf16>, vector<8x128xbf16>, vector<128x128xf32> -> vector<128x128xf32>
    %c0_14 = arith.constant 0 : index
    %c0_15 = arith.constant 0 : index
    %37 = vector.load %arg28[%c0_14, %c0_15] : memref<8x128xbf16, #tpu.memory_space<vmem>>, vector<8x128xbf16>
    %cst_16 = arith.constant dense<0.000000e+00> : vector<128x128xf32>
    %38 = tpu.matmul %24, %37, %cst_16 {dimension_numbers = #tpu.dot_dimension_numbers<[1], [0], [0], [1], [0, 0, 1, 1], [], []>} : vector<128x8xbf16>, vector<8x128xbf16>, vector<128x128xf32> -> vector<128x128xf32>
    %39 = arith.addf %36, %38 : vector<128x128xf32>
    %c0_17 = arith.constant 0 : index
    %c0_18 = arith.constant 0 : index
    %c0_19 = arith.constant 0 : index
    %40 = vector.load %arg8[%c0_17, %c0_18, %c0_19] : memref<1x4x128xbf16, #tpu.memory_space<vmem>>, vector<1x4x128xbf16>
    %41 = vector.shape_cast %40 : vector<1x4x128xbf16> to vector<4x128xbf16>
    %cst_20 = arith.constant dense<0.000000e+00> : vector<128x128xf32>
    %42 = tpu.matmul %12, %41, %cst_20 {dimension_numbers = #tpu.dot_dimension_numbers<[1], [0], [0], [1], [0, 0, 1, 1], [], []>} : vector<128x4xbf16>, vector<4x128xbf16>, vector<128x128xf32> -> vector<128x128xf32>
    %43 = arith.addf %39, %42 : vector<128x128xf32>
    %c0_21 = arith.constant 0 : index
    %c0_22 = arith.constant 0 : index
    %c0_23 = arith.constant 0 : index
    %44 = vector.load %arg9[%c0_21, %c0_22, %c0_23] : memref<1x1x128xf32, #tpu.memory_space<vmem>>, vector<1x1x128xf32>
    %45 = vector.shape_cast %44 : vector<1x1x128xf32> to vector<1x128xf32>
    %46 = vector.broadcast %45 : vector<1x128xf32> to vector<128x128xf32>
    %47 = arith.addf %43, %46 : vector<128x128xf32>
    %c0_24 = arith.constant 0 : index
    %c0_25 = arith.constant 0 : index
    %48 = vector.load %arg29[%c0_24, %c0_25] : memref<8x128xbf16, #tpu.memory_space<vmem>>, vector<8x128xbf16>
    %cst_26 = arith.constant dense<0.000000e+00> : vector<128x128xf32>
    %49 = tpu.matmul %19, %48, %cst_26 {dimension_numbers = #tpu.dot_dimension_numbers<[1], [0], [0], [1], [0, 0, 1, 1], [], []>} : vector<128x8xbf16>, vector<8x128xbf16>, vector<128x128xf32> -> vector<128x128xf32>
    %c0_27 = arith.constant 0 : index
    %c0_28 = arith.constant 0 : index
    %50 = vector.load %arg30[%c0_27, %c0_28] : memref<8x128xbf16, #tpu.memory_space<vmem>>, vector<8x128xbf16>
    %cst_29 = arith.constant dense<0.000000e+00> : vector<128x128xf32>
    %51 = tpu.matmul %24, %50, %cst_29 {dimension_numbers = #tpu.dot_dimension_numbers<[1], [0], [0], [1], [0, 0, 1, 1], [], []>} : vector<128x8xbf16>, vector<8x128xbf16>, vector<128x128xf32> -> vector<128x128xf32>
    %52 = arith.addf %49, %51 : vector<128x128xf32>
    %c0_30 = arith.constant 0 : index
    %c0_31 = arith.constant 0 : index
    %c0_32 = arith.constant 0 : index
    %53 = vector.load %arg12[%c0_30, %c0_31, %c0_32] : memref<1x4x128xbf16, #tpu.memory_space<vmem>>, vector<1x4x128xbf16>
    %54 = vector.shape_cast %53 : vector<1x4x128xbf16> to vector<4x128xbf16>
    %cst_33 = arith.constant dense<0.000000e+00> : vector<128x128xf32>
    %55 = tpu.matmul %12, %54, %cst_33 {dimension_numbers = #tpu.dot_dimension_numbers<[1], [0], [0], [1], [0, 0, 1, 1], [], []>} : vector<128x4xbf16>, vector<4x128xbf16>, vector<128x128xf32> -> vector<128x128xf32>
    %56 = arith.addf %52, %55 : vector<128x128xf32>
    %c0_34 = arith.constant 0 : index
    %c0_35 = arith.constant 0 : index
    %c0_36 = arith.constant 0 : index
    %57 = vector.load %arg13[%c0_34, %c0_35, %c0_36] : memref<1x1x128xf32, #tpu.memory_space<vmem>>, vector<1x1x128xf32>
    %58 = vector.shape_cast %57 : vector<1x1x128xf32> to vector<1x128xf32>
    %59 = vector.broadcast %58 : vector<1x128xf32> to vector<128x128xf32>
    %60 = arith.addf %56, %59 : vector<128x128xf32>
    %c0_37 = arith.constant 0 : index
    %c0_38 = arith.constant 0 : index
    %61 = vector.load %arg25[%c0_37, %c0_38] : memref<8x128xf32, #tpu.memory_space<vmem>>, vector<8x128xf32>
    %62 = arith.truncf %47 : vector<128x128xf32> to vector<128x128xbf16>
    %cst_39 = arith.constant dense<0.000000e+00> : vector<8x128xf32>
    %63 = tpu.matmul %34, %62, %cst_39 {dimension_numbers = #tpu.dot_dimension_numbers<[1], [0], [0], [1], [0, 0, 1, 1], [], []>} : vector<8x128xbf16>, vector<128x128xbf16>, vector<8x128xf32> -> vector<8x128xf32>
    %64 = arith.truncf %60 : vector<128x128xf32> to vector<128x128xbf16>
    %cst_40 = arith.constant dense<0.000000e+00> : vector<8x128xf32>
    %65 = tpu.matmul %29, %64, %cst_40 {dimension_numbers = #tpu.dot_dimension_numbers<[1], [0], [0], [1], [0, 0, 1, 1], [], []>} : vector<8x128xbf16>, vector<128x128xbf16>, vector<8x128xf32> -> vector<8x128xf32>
    %66 = arith.addf %63, %65 : vector<8x128xf32>
    %67 = arith.addf %61, %66 : vector<8x128xf32>
    %c0_41 = arith.constant 0 : index
    %c0_42 = arith.constant 0 : index
    %68 = vector.load %arg25[%c0_41, %c0_42] : memref<8x128xf32, #tpu.memory_space<vmem>>, vector<8x128xf32>
    tpu.vector_store %arg25[%c0_41, %c0_42], %67 {strides = array<i32>} : memref<8x128xf32, #tpu.memory_space<vmem>>, vector<8x128xf32>,
    %c0_i32_43 = arith.constant 0 : i32
    %69 = arith.cmpi eq, %arg1, %c0_i32_43 : i32
    %70 = arith.extui %69 : i1 to i32
    %c0_i32_44 = arith.constant 0 : i32
    %71 = arith.cmpi ne, %70, %c0_i32_44 : i32
    scf.if %71 {
      %c0_45 = arith.constant 0 : index
      %c0_46 = arith.constant 0 : index
      %72 = vector.load %arg26[%c0_45, %c0_46] : memref<8x64xf32, #tpu.memory_space<vmem>>, vector<8x64xf32>
      %c0_47 = arith.constant 0 : index
      %c0_48 = arith.constant 0 : index
      %73 = vector.load %arg25[%c0_47, %c0_48] : memref<8x128xf32, #tpu.memory_space<vmem>>, vector<8x128xf32>
      %c0_49 = arith.constant 0 : index
      %c0_50 = arith.constant 0 : index
      %c0_51 = arith.constant 0 : index
      %74 = vector.load %arg14[%c0_49, %c0_50, %c0_51] : memref<1x128x64xf32, #tpu.memory_space<vmem>>, vector<1x128x64xf32>
      %75 = vector.shape_cast %74 : vector<1x128x64xf32> to vector<128x64xf32>
      %cst_52 = arith.constant dense<0.000000e+00> : vector<8x64xf32>
      %76 = tpu.matmul %73, %75, %cst_52 {dimension_numbers = #tpu.dot_dimension_numbers<[1], [0], [0], [1], [0, 0, 1, 1], [], []>} : vector<8x128xf32>, vector<128x64xf32>, vector<8x64xf32> -> vector<8x64xf32>
      %c0_53 = arith.constant 0 : index
      %c0_54 = arith.constant 0 : index
      %c0_55 = arith.constant 0 : index
      %77 = vector.load %arg15[%c0_53, %c0_54, %c0_55] : memref<1x64x64xf32, #tpu.memory_space<vmem>>, vector<1x64x64xf32>
      %78 = vector.shape_cast %77 : vector<1x64x64xf32> to vector<64x64xf32>
      %cst_56 = arith.constant dense<0.000000e+00> : vector<8x64xf32>
      %79 = tpu.matmul %72, %78, %cst_56 {dimension_numbers = #tpu.dot_dimension_numbers<[1], [0], [0], [1], [0, 0, 1, 1], [], []>} : vector<8x64xf32>, vector<64x64xf32>, vector<8x64xf32> -> vector<8x64xf32>
      %80 = arith.addf %76, %79 : vector<8x64xf32>
      %c0_57 = arith.constant 0 : index
      %c0_58 = arith.constant 0 : index
      %c0_59 = arith.constant 0 : index
      %81 = vector.load %arg16[%c0_57, %c0_58, %c0_59] : memref<1x1x64xf32, #tpu.memory_space<vmem>>, vector<1x1x64xf32>
      %82 = vector.shape_cast %81 : vector<1x1x64xf32> to vector<1x64xf32>
      %83 = vector.broadcast %82 : vector<1x64xf32> to vector<8x64xf32>
      %84 = arith.addf %80, %83 : vector<8x64xf32>
      %85 = arith.negf %84 : vector<8x64xf32>
      %86 = math.exp %85 : vector<8x64xf32>
      %cst_60 = arith.constant 1.000000e+00 : f32
      %87 = vector.broadcast %cst_60 : f32 to vector<8x64xf32>
      %88 = arith.addf %87, %86 : vector<8x64xf32>
      %89 = arith.divf %87, %88 : vector<8x64xf32>
      %c0_61 = arith.constant 0 : index
      %c0_62 = arith.constant 0 : index
      %c0_63 = arith.constant 0 : index
      %90 = vector.load %arg17[%c0_61, %c0_62, %c0_63] : memref<1x128x64xf32, #tpu.memory_space<vmem>>, vector<1x128x64xf32>
      %91 = vector.shape_cast %90 : vector<1x128x64xf32> to vector<128x64xf32>
      %cst_64 = arith.constant dense<0.000000e+00> : vector<8x64xf32>
      %92 = tpu.matmul %73, %91, %cst_64 {dimension_numbers = #tpu.dot_dimension_numbers<[1], [0], [0], [1], [0, 0, 1, 1], [], []>} : vector<8x128xf32>, vector<128x64xf32>, vector<8x64xf32> -> vector<8x64xf32>
      %c0_65 = arith.constant 0 : index
      %c0_66 = arith.constant 0 : index
      %c0_67 = arith.constant 0 : index
      %93 = vector.load %arg18[%c0_65, %c0_66, %c0_67] : memref<1x64x64xf32, #tpu.memory_space<vmem>>, vector<1x64x64xf32>
      %94 = vector.shape_cast %93 : vector<1x64x64xf32> to vector<64x64xf32>
      %cst_68 = arith.constant dense<0.000000e+00> : vector<8x64xf32>
      %95 = tpu.matmul %72, %94, %cst_68 {dimension_numbers = #tpu.dot_dimension_numbers<[1], [0], [0], [1], [0, 0, 1, 1], [], []>} : vector<8x64xf32>, vector<64x64xf32>, vector<8x64xf32> -> vector<8x64xf32>
      %96 = arith.addf %92, %95 : vector<8x64xf32>
      %c0_69 = arith.constant 0 : index
      %c0_70 = arith.constant 0 : index
      %c0_71 = arith.constant 0 : index
      %97 = vector.load %arg19[%c0_69, %c0_70, %c0_71] : memref<1x1x64xf32, #tpu.memory_space<vmem>>, vector<1x1x64xf32>
      %98 = vector.shape_cast %97 : vector<1x1x64xf32> to vector<1x64xf32>
      %99 = vector.broadcast %98 : vector<1x64xf32> to vector<8x64xf32>
      %100 = arith.addf %96, %99 : vector<8x64xf32>
      %101 = arith.negf %100 : vector<8x64xf32>
      %102 = math.exp %101 : vector<8x64xf32>
      %cst_72 = arith.constant 1.000000e+00 : f32
      %103 = vector.broadcast %cst_72 : f32 to vector<8x64xf32>
      %104 = arith.addf %103, %102 : vector<8x64xf32>
      %105 = arith.divf %103, %104 : vector<8x64xf32>
      %c0_73 = arith.constant 0 : index
      %c0_74 = arith.constant 0 : index
      %c0_75 = arith.constant 0 : index
      %106 = vector.load %arg20[%c0_73, %c0_74, %c0_75] : memref<1x128x64xf32, #tpu.memory_space<vmem>>, vector<1x128x64xf32>
      %107 = vector.shape_cast %106 : vector<1x128x64xf32> to vector<128x64xf32>
      %cst_76 = arith.constant dense<0.000000e+00> : vector<8x64xf32>
      %108 = tpu.matmul %73, %107, %cst_76 {dimension_numbers = #tpu.dot_dimension_numbers<[1], [0], [0], [1], [0, 0, 1, 1], [], []>} : vector<8x128xf32>, vector<128x64xf32>, vector<8x64xf32> -> vector<8x64xf32>
      %c0_77 = arith.constant 0 : index
      %c0_78 = arith.constant 0 : index
      %c0_79 = arith.constant 0 : index
      %109 = vector.load %arg21[%c0_77, %c0_78, %c0_79] : memref<1x1x64xf32, #tpu.memory_space<vmem>>, vector<1x1x64xf32>
      %110 = vector.shape_cast %109 : vector<1x1x64xf32> to vector<1x64xf32>
      %111 = vector.broadcast %110 : vector<1x64xf32> to vector<8x64xf32>
      %112 = arith.addf %108, %111 : vector<8x64xf32>
      %c0_80 = arith.constant 0 : index
      %c0_81 = arith.constant 0 : index
      %c0_82 = arith.constant 0 : index
      %113 = vector.load %arg22[%c0_80, %c0_81, %c0_82] : memref<1x64x64xf32, #tpu.memory_space<vmem>>, vector<1x64x64xf32>
      %114 = vector.shape_cast %113 : vector<1x64x64xf32> to vector<64x64xf32>
      %cst_83 = arith.constant dense<0.000000e+00> : vector<8x64xf32>
      %115 = tpu.matmul %72, %114, %cst_83 {dimension_numbers = #tpu.dot_dimension_numbers<[1], [0], [0], [1], [0, 0, 1, 1], [], []>} : vector<8x64xf32>, vector<64x64xf32>, vector<8x64xf32> -> vector<8x64xf32>
      %c0_84 = arith.constant 0 : index
      %c0_85 = arith.constant 0 : index
      %c0_86 = arith.constant 0 : index
      %116 = vector.load %arg23[%c0_84, %c0_85, %c0_86] : memref<1x1x64xf32, #tpu.memory_space<vmem>>, vector<1x1x64xf32>
      %117 = vector.shape_cast %116 : vector<1x1x64xf32> to vector<1x64xf32>
      %118 = vector.broadcast %117 : vector<1x64xf32> to vector<8x64xf32>
      %119 = arith.addf %115, %118 : vector<8x64xf32>
      %120 = arith.mulf %89, %119 : vector<8x64xf32>
      %121 = arith.addf %112, %120 : vector<8x64xf32>
      %122 = math.tanh %121 : vector<8x64xf32>
      %cst_87 = arith.constant 1.000000e+00 : f32
      %123 = vector.broadcast %cst_87 : f32 to vector<8x64xf32>
      %124 = arith.subf %123, %105 : vector<8x64xf32>
      %125 = arith.mulf %124, %122 : vector<8x64xf32>
      %126 = arith.mulf %105, %72 : vector<8x64xf32>
      %127 = arith.addf %125, %126 : vector<8x64xf32>
      %c0_88 = arith.constant 0 : index
      %c0_89 = arith.constant 0 : index
      %128 = vector.load %arg26[%c0_88, %c0_89] : memref<8x64xf32, #tpu.memory_space<vmem>>, vector<8x64xf32>
      tpu.vector_store %arg26[%c0_88, %c0_89], %127 {strides = array<i32>} : memref<8x64xf32, #tpu.memory_space<vmem>>, vector<8x64xf32>,
      %c0_90 = arith.constant 0 : index
      %c0_91 = arith.constant 0 : index
      %129 = vector.load %arg24[%c0_90, %c0_91] : memref<8x64xf32, #tpu.memory_space<vmem>>, vector<8x64xf32>
      tpu.vector_store %arg24[%c0_90, %c0_91], %127 {strides = array<i32>} : memref<8x64xf32, #tpu.memory_space<vmem>>, vector<8x64xf32>,
    } else {
    }
    return
  }
  func.func @transform_0(%arg0: i32, %arg1: i32) -> (i32, i32) {
    %c0_i32 = arith.constant 0 : i32
    %c0_i32_0 = arith.constant 0 : i32
    %c0_i32_1 = arith.constant 0 : i32
    return %c0_i32, %c0_i32_0 : i32, i32
  }
  func.func @transform_1(%arg0: i32, %arg1: i32) -> (i32, i32) {
    %c0_i32 = arith.constant 0 : i32
    %c0_i32_0 = arith.constant 0 : i32
    return %c0_i32, %arg1 : i32, i32
  }
  func.func @transform_2(%arg0: i32, %arg1: i32) -> (i32, i32) {
    %c0_i32 = arith.constant 0 : i32
    %c0_i32_0 = arith.constant 0 : i32
    return %arg1, %c0_i32 : i32, i32
  }
  func.func @transform_3(%arg0: i32, %arg1: i32) -> (i32, i32) {
    %c0_i32 = arith.constant 0 : i32
    %c0_i32_0 = arith.constant 0 : i32
    return %arg1, %c0_i32 : i32, i32
  }
  func.func @transform_4(%arg0: i32, %arg1: i32) -> (i32, i32, i32) {
    %c0_i32 = arith.constant 0 : i32
    %c0_i32_0 = arith.constant 0 : i32
    %c0_i32_1 = arith.constant 0 : i32
    return %arg0, %c0_i32, %c0_i32_0 : i32, i32, i32
  }
  func.func @transform_5(%arg0: i32, %arg1: i32) -> (i32, i32, i32) {
    %c0_i32 = arith.constant 0 : i32
    %c0_i32_0 = arith.constant 0 : i32
    %c0_i32_1 = arith.constant 0 : i32
    return %arg0, %c0_i32, %c0_i32_0 : i32, i32, i32
  }
  func.func @transform_6(%arg0: i32, %arg1: i32) -> (i32, i32, i32) {
    %c0_i32 = arith.constant 0 : i32
    %c0_i32_0 = arith.constant 0 : i32
    %c0_i32_1 = arith.constant 0 : i32
    return %arg0, %c0_i32, %c0_i32_0 : i32, i32, i32
  }
  func.func @transform_7(%arg0: i32, %arg1: i32) -> (i32, i32, i32) {
    %c0_i32 = arith.constant 0 : i32
    %c0_i32_0 = arith.constant 0 : i32
    %c0_i32_1 = arith.constant 0 : i32
    return %arg0, %c0_i32, %c0_i32_0 : i32, i32, i32
  }
  func.func @transform_8(%arg0: i32, %arg1: i32) -> (i32, i32, i32) {
    %c0_i32 = arith.constant 0 : i32
    %c0_i32_0 = arith.constant 0 : i32
    %c0_i32_1 = arith.constant 0 : i32
    return %arg0, %c0_i32, %c0_i32_0 : i32, i32, i32
  }
  func.func @transform_9(%arg0: i32, %arg1: i32) -> (i32, i32, i32) {
    %c0_i32 = arith.constant 0 : i32
    %c0_i32_0 = arith.constant 0 : i32
    %c0_i32_1 = arith.constant 0 : i32
    return %arg0, %c0_i32, %c0_i32_0 : i32, i32, i32
  }
  func.func @transform_10(%arg0: i32, %arg1: i32) -> (i32, i32, i32) {
    %c0_i32 = arith.constant 0 : i32
    %c0_i32_0 = arith.constant 0 : i32
    %c0_i32_1 = arith.constant 0 : i32
    return %arg0, %c0_i32, %c0_i32_0 : i32, i32, i32
  }
  func.func @transform_11(%arg0: i32, %arg1: i32) -> (i32, i32, i32) {
    %c0_i32 = arith.constant 0 : i32
    %c0_i32_0 = arith.constant 0 : i32
    %c0_i32_1 = arith.constant 0 : i32
    return %arg0, %c0_i32, %c0_i32_0 : i32, i32, i32
  }
  func.func @transform_12(%arg0: i32, %arg1: i32) -> (i32, i32, i32) {
    %c0_i32 = arith.constant 0 : i32
    %c0_i32_0 = arith.constant 0 : i32
    %c0_i32_1 = arith.constant 0 : i32
    return %arg0, %c0_i32, %c0_i32_0 : i32, i32, i32
  }
  func.func @transform_13(%arg0: i32, %arg1: i32) -> (i32, i32, i32) {
    %c0_i32 = arith.constant 0 : i32
    %c0_i32_0 = arith.constant 0 : i32
    %c0_i32_1 = arith.constant 0 : i32
    return %arg0, %c0_i32, %c0_i32_0 : i32, i32, i32
  }
  func.func @transform_14(%arg0: i32, %arg1: i32) -> (i32, i32, i32) {
    %c0_i32 = arith.constant 0 : i32
    %c0_i32_0 = arith.constant 0 : i32
    %c0_i32_1 = arith.constant 0 : i32
    return %arg0, %c0_i32, %c0_i32_0 : i32, i32, i32
  }
  func.func @transform_15(%arg0: i32, %arg1: i32) -> (i32, i32, i32) {
    %c0_i32 = arith.constant 0 : i32
    %c0_i32_0 = arith.constant 0 : i32
    %c0_i32_1 = arith.constant 0 : i32
    return %arg0, %c0_i32, %c0_i32_0 : i32, i32, i32
  }
  func.func @transform_16(%arg0: i32, %arg1: i32) -> (i32, i32, i32) {
    %c0_i32 = arith.constant 0 : i32
    %c0_i32_0 = arith.constant 0 : i32
    %c0_i32_1 = arith.constant 0 : i32
    return %arg0, %c0_i32, %c0_i32_0 : i32, i32, i32
  }
  func.func @transform_17(%arg0: i32, %arg1: i32) -> (i32, i32, i32) {
    %c0_i32 = arith.constant 0 : i32
    %c0_i32_0 = arith.constant 0 : i32
    %c0_i32_1 = arith.constant 0 : i32
    return %arg0, %c0_i32, %c0_i32_0 : i32, i32, i32
  }
  func.func @transform_18(%arg0: i32, %arg1: i32) -> (i32, i32, i32) {
    %c0_i32 = arith.constant 0 : i32
    %c0_i32_0 = arith.constant 0 : i32
    %c0_i32_1 = arith.constant 0 : i32
    return %arg0, %c0_i32, %c0_i32_0 : i32, i32, i32
  }
  func.func @transform_19(%arg0: i32, %arg1: i32) -> (i32, i32, i32) {
    %c0_i32 = arith.constant 0 : i32
    %c0_i32_0 = arith.constant 0 : i32
    %c0_i32_1 = arith.constant 0 : i32
    return %arg0, %c0_i32, %c0_i32_0 : i32, i32, i32
  }
  func.func @transform_20(%arg0: i32, %arg1: i32) -> (i32, i32, i32) {
    %c0_i32 = arith.constant 0 : i32
    %c0_i32_0 = arith.constant 0 : i32
    %c0_i32_1 = arith.constant 0 : i32
    return %arg0, %c0_i32, %c0_i32_0 : i32, i32, i32
  }
  func.func @transform_21(%arg0: i32, %arg1: i32) -> (i32, i32, i32) {
    %c0_i32 = arith.constant 0 : i32
    %c0_i32_0 = arith.constant 0 : i32
    %c0_i32_1 = arith.constant 0 : i32
    return %arg0, %c0_i32, %c0_i32_0 : i32, i32, i32
  }
  func.func @transform_22(%arg0: i32, %arg1: i32) -> (i32, i32) {
    %c0_i32 = arith.constant 0 : i32
    %c0_i32_0 = arith.constant 0 : i32
    %c0_i32_1 = arith.constant 0 : i32
    return %c0_i32, %c0_i32_0 : i32, i32
  }
}

</mosaic_0001>

<bundles_post_ra>
// kernel: tpu_custom_call.1
= control target key start
LH: loop header
LB: loop body
LE: loop exit
PB: predicated region body
PF: predicated region fallthrough
CT: control target
= control target key end

     0   :  { %s3774_s0 = inlined_call_operand.vmem [shape: f32[8,64], index: 0, kind: input, shape index: {}]   ;;  %s3775_s1 = inlined_call_operand.vmem [shape: s32[2,128], index: 1, kind: input, shape index: {}]   ;;  %s3776_s2 = inlined_call_operand.vmem [shape: s32[128,2], index: 2, kind: input, shape index: {}]   ;;  %s3777_s3 = inlined_call_operand.vmem [shape: bf16[128,4], index: 3, kind: input, shape index: {}]   ;;  %s3778_s4 = inlined_call_operand.vmem [shape: bf16[3,64,128], index: 4, kind: input, shape index: {}]   ;;  %s3779_s5 = inlined_call_operand.vmem [shape: bf16[3,64,128], index: 5, kind: input, shape index: {}]   ;;  %s3780_s6 = inlined_call_operand.vmem [shape: bf16[3,4,128], index: 6, kind: input, shape index: {}]   ;;  %s3781_s7 = inlined_call_operand.vmem [shape: f32[3,1,128], index: 7, kind: input, shape index: {}]   ;;  %s3782_s8 = inlined_call_operand.vmem [shape: bf16[3,64,128], index: 8, kind: input, shape index: {}]   ;;  %s3783_s9 = inlined_call_operand.vmem [shape: bf16[3,64,128], index: 9, kind: input, shape index: {}]   ;;  %s3784_s10 = inlined_call_operand.vmem [shape: bf16[3,4,128], index: 10, kind: input, shape index: {}]   ;;  %s3785_s11 = inlined_call_operand.vmem [shape: f32[3,1,128], index: 11, kind: input, shape index: {}]   ;;  %s3786_s12 = inlined_call_operand.vmem [shape: f32[3,128,64], index: 12, kind: input, shape index: {}]   ;;  %s3787_s13 = inlined_call_operand.vmem [shape: f32[3,64,64], index: 13, kind: input, shape index: {}]   ;;  %s3788_s14 = inlined_call_operand.vmem [shape: f32[3,1,64], index: 14, kind: input, shape index: {}]   ;;  %s3789_s15 = inlined_call_operand.vmem [shape: f32[3,128,64], index: 15, kind: input, shape index: {}]   ;;  %s3790_s16 = inlined_call_operand.vmem [shape: f32[3,64,64], index: 16, kind: input, shape index: {}]   ;;  %s3791_s17 = inlined_call_operand.vmem [shape: f32[3,1,64], index: 17, kind: input, shape index: {}]   ;;  %s3792_s18 = inlined_call_operand.vmem [shape: f32[3,128,64], index: 18, kind: input, shape index: {}]   ;;  %s3793_s19 = inlined_call_operand.vmem [shape: f32[3,1,64], index: 19, kind: input, shape index: {}]   ;;  %s3794_s20 = inlined_call_operand.vmem [shape: f32[3,64,64], index: 20, kind: input, shape index: {}]   ;;  %s3795_s21 = inlined_call_operand.vmem [shape: f32[3,1,64], index: 21, kind: input, shape index: {}]   ;;  %s3796_s22 = inlined_call_operand.hbm [shape: f32[8,64], index: 22, kind: output, shape index: {}]  }
   0x1   :  { %3805 = sst [smem:[#allocation18_spill]] %s3774_s0 }
   0x2   :  { %3806 = sst [smem:[#allocation19_spill]] %s3775_s1 }
   0x3   :  { %3807 = sst [smem:[#allocation20_spill]] %s3776_s2 }
   0x4   :  { %3808 = sst [smem:[#allocation21_spill]] %s3777_s3 }
   0x5   :  { %3809 = sst [smem:[#allocation22_spill]] %s3778_s4 }
   0x6   :  { %3810 = sst [smem:[#allocation23_spill]] %s3779_s5 }
   0x7   :  { %3811 = sst [smem:[#allocation24_spill]] %s3780_s6 }
   0x8   :  { %3812 = sst [smem:[#allocation25_spill]] %s3781_s7 }
   0x9   :  { %3813 = sst [smem:[#allocation26_spill]] %s3782_s8 }
   0xa   :  { %3814 = sst [smem:[#allocation27_spill]] %s3783_s9 }
   0xb   :  { %3815 = sst [smem:[#allocation28_spill]] %s3784_s10 }
   0xc   :  { %3816 = sst [smem:[#allocation29_spill]] %s3786_s12 }
   0xd   :  { %3817 = sst [smem:[#allocation30_spill]] %s3787_s13 }
   0xe   :  { %3818 = sst [smem:[#allocation31_spill]] %s3788_s14 }
   0xf   :  { %3819 = sst [smem:[#allocation32_spill]] %s3789_s15 }
  0x10   :  { %3820 = sst [smem:[#allocation33_spill]] %s3790_s16 }
  0x11   :  { %3821 = sst [smem:[#allocation34_spill]] %s3793_s19 }
  0x12   :  { %3822 = sst [smem:[#allocation35_spill]] %s3794_s20 }
  0x13   :  { %3823 = sst [smem:[#allocation36_spill]] %s3795_s21 }
  0x14   :  { %3824 = sst [smem:[#allocation37_spill]] %s3796_s22 }
  0x15   :  { %27 = vsyncpa [#allocation9], 0  ;;  %s3118_s3 = smov 0   ;;  %s3120_s28 = smov 0  }
  0x16   :  { %s3122_s29 = smov 0  }
  0x17 LB: > { %3825 = sst [smem:[#allocation11_spill]] %s2988_s3  ;;  %s45_s4 = sadd.s32 1, %s2992_s28  ;;  %s2996_s29 = sphi %s3122_s29, %s33_s29   ;;  %s2992_s28 = sphi %s3120_s28, %s3867_s28   ;;  %s2988_s3 = sphi %s3118_s3, %s3866_s3  }
  0x18   : > { %3826 = sst [smem:[#allocation12_spill]] %s2992_s28  ;;  %p47_p0 = scmp.ge.s32.totalorder %s45_s4, 3 }
  0x19   : > { %3827 = sst [smem:[#allocation13_spill]] %s2996_s29  ;;  %p2616_p1 = scmp.ge.s32.totalorder %s2996_s29, 1 }
  0x1a   : > { %p807_p2 = scmp.lt.s32.totalorder %s2996_s29, 4  ;;  %s3869_s4 = smov (%p47_p0, %s45_s4), 0 }
  0x1b   : > { %3828 = sst [smem:[#allocation14_spill]] %s3869_s4 }
  0x1c   : > { %p808_p3 = pnand %p2616_p1, %p807_p2 }
  0x1e   : > { %811 = sbr.rel (%p808_p3) target bundleno = 956 (0x3bc), region = 108 }
  0x23   : > { %p965_p4 = scmp.lt.s32.totalorder %s2988_s3, 2  ;;  %p1042_p5 = scmp.eq.s32.totalorder %s2988_s3, 0 }
  0x24   : > { %s3829_s6 = sld [smem:[#allocation22_spill]]  ;;  %vm1049_vm0 = vcmask (%p1042_p5), 523264  }
  0x25   : > { %s3142_s0 = scalar_select %p965_p4, %s2988_s3, 2 }
  0x26   : > { %s3830_s27 = sld [smem:[#allocation23_spill]] }
  0x27   : > { %s2835_s23 = sshll.u32 %s3142_s0, 5  ;;  %s2621_s1 = sshll.u32 %s3142_s0, 1 }
  0x28   : > { %s3831_s22 = sld [smem:[#allocation24_spill]]  ;;  %s2839_s3 = sshll.u32 %s3142_s0, 7 }
  0x29   : > { %s3834_s8 = sld [smem:[#allocation26_spill]]  ;;  %s2840_s20 = sshll.u32 %s3142_s0, 6 }
  0x2a   : > { %s3149_s25 = scalar_lea.vmem %s3829_s6, %s2835_s23  ;;  %s3835_s9 = sld [smem:[#allocation27_spill]] }
  0x2b   : > { %s3836_s10 = sld [smem:[#allocation28_spill]]  ;;  %s1024_s7 = scalar_lea.vmem %s3791_s17, %s3142_s0 }
  0x2c   : > { %s3154_s30 = scalar_lea.vmem %s3830_s27, %s2835_s23  ;;  %s3837_s12 = sld [smem:[#allocation29_spill]] }
  0x2d   : > { %s3838_s13 = sld [smem:[#allocation30_spill]] }
  0x2e   : > { %s3159_s29 = scalar_lea.vmem %s3831_s22, %s2621_s1  ;;  %s3840_s15 = sld [smem:[#allocation32_spill]] }
  0x2f   : > { %3832 = sst [smem:[#allocation15_spill]] %s3159_s29  ;;  %s3168_s24 = scalar_lea.vmem %s3834_s8, %s2835_s23 }
  0x30   : > { %s3173_s2 = scalar_lea.vmem %s3835_s9, %s2835_s23  ;;  %s3842_s16 = sld [smem:[#allocation33_spill]] }
  0x31   : > { %s3178_s22 = scalar_lea.vmem %s3836_s10, %s2621_s1  ;;  %s3844_s1 = sld [smem:[#allocation34_spill]] }
  0x32   : > { %s3189_s8 = scalar_lea.vmem %s3837_s12, %s2839_s3  ;;  %s3845_s14 = sld [smem:[#allocation35_spill]] }
  0x33   : > { %s3194_s23 = scalar_lea.vmem %s3838_s13, %s2840_s20  ;;  %s3217_s13 = scalar_lea.vmem %s3792_s18, %s2839_s3 }
  0x34   : > { %s3203_s29 = scalar_lea.vmem %s3840_s15, %s2839_s3  ;;  %s3848_s3 = sld [smem:[#allocation18_spill]] (%p1042_p5) }
  0x35   : > { %3841 = sst [smem:[#allocation16_spill]] %s3203_s29 }
  0x36   : > { %s3208_s19 = scalar_lea.vmem %s3842_s16, %s2840_s20  ;;  %s3846_s16 = sld [smem:[#allocation36_spill]] }
  0x37   : > { %3843 = sst [smem:[#allocation17_spill]] %s3208_s19  ;;  %s1032_s9 = scalar_lea.vmem %s3844_s1, %s3142_s0 }
  0x38   : > { %s3226_s29 = scalar_lea.vmem %s3845_s14, %s2840_s20  ;;  %1047 = sbr.rel (!%p1042_p5) target bundleno = 61 (0x3d), region = 112 }
  0x3a   : > { %v1048_v0 = vld [vmem:[%s3848_s3] sm:$0xff] (%p1042_p5) }
  0x3b   : > { %1050 = vst.msk [vmem:[#allocation3] sm:$0xff] (%p1042_p5), %vm1049_vm0, %v1048_v0 }
  0x3c   : > { %s1040_s19 = scalar_lea.vmem %s3846_s16, %s3142_s0 }
  0x3d PF: > { %v2849_v1 = vld [vmem:[%s3149_s25 + $0x18] sm:$0xff]  ;;  %v2998_v3 = vmov 0   ;;  %v2999_v4 = vmov 1   ;;  %v2848_v5 = vld [vmem:[%s3149_s25 + $0x10] sm:$0xff]  ;;  %s3849_s16 = sld [smem:[#allocation20_spill]]  ;;  %v2847_v8 = vld [vmem:[%s3149_s25 + $0x8] sm:$0xff]  ;;  %v1283_v43 = vlaneseq  ;;  %s3854_s1 = scalar_lea.vmem %s3785_s11, %s3142_s0 }
  0x3e   : > { %v2853_v2 = vld [vmem:[%s3154_s30 + $0x18] sm:$0xff]  ;;  %2906 = vset.pattern.permute.xlu1 %v2998_v3  ;;  %2905 = vset.pattern.permute.xlu0 %v2999_v4  ;;  %v2852_v6 = vld [vmem:[%s3154_s30 + $0x10] sm:$0xff]  ;;  %v2851_v9 = vld [vmem:[%s3154_s30 + $0x8] sm:$0xff]  ;;  %vm1089_vm1 = vcmask 523264   ;;  %s3850_s21 = sld [smem:[#allocation15_spill]]  ;;  %vm1727_vm2 = vcmask 1041408  }
  0x3f   : > { %1097 = vmatpush.bf16.msra.mxu3 %v2849_v1  ;;  %1144 = vmatpush.bf16.msra.mxu2 %v2853_v2  ;;  %v2846_v12 = vld [vmem:[%s3149_s25] sm:$0xff]  ;;  %v2861_v15 = vld [vmem:[%s3173_s2 + $0x18] sm:$0xff]  ;;  %v2860_v18 = vld [vmem:[%s3173_s2 + $0x10] sm:$0xff]  ;;  %s3851_s14 = sld [smem:[#allocation21_spill]]  ;;  %vm1702_vm3 = vcmask 31744   ;;  %v3341_v48 = vand.u32 127, %v1283_v43 }
  0x40   : > { %2907 = vset.pattern.permute.xlu2 %v2999_v4  ;;  %v2850_v13 = vld [vmem:[%s3154_s30] sm:$0xff]  ;;  %v2859_v19 = vld [vmem:[%s3173_s2 + $0x8] sm:$0xff]  ;;  %v2857_v23 = vld [vmem:[%s3168_s24 + $0x18] sm:$0xff]  ;;  %vm1532_vm8 = vcmask 1043456   ;;  %v3000_v55 = vmov 0.0   ;;  %vm1507_vm9 = vcmask 64512  }
  0x41   : > { %v2858_v21 = vld [vmem:[%s3173_s2] sm:$0xff]  ;;  %v2856_v25 = vld [vmem:[%s3168_s24 + $0x10] sm:$0xff]  ;;  %v2855_v27 = vld [vmem:[%s3168_s24 + $0x8] sm:$0xff]  ;;  %s3852_s12 = sld [smem:[#allocation25_spill]] }
  0x42   : > { %v1055_v14 = vld [vmem:[#allocation3] sm:$0xff]  ;;  %s3855_s26 = sld [smem:[#allocation19_spill]] }
  0x43   : > { %v1249_v7 = vld [vmem:[%s3849_s16] sm:$0xff]  ;;  %1098 = vmatpush.bf16.msra.mxu3 %v2848_v5  ;;  %1145 = vmatpush.bf16.msra.mxu2 %v2852_v6  ;;  %v1251_v10 = vld [vmem:[%s3849_s16 + $0x10] sm:$0xff]  ;;  %v1250_v11 = vld [vmem:[%s3849_s16 + $0x8] sm:$0xff]  ;;  %v1056_v16 = vpack.c.bf16 %v1055_v14, %v1055_v14  ;;  %s3856_s30 = sld [smem:[#allocation17_spill]] }
  0x44   : > { %1288 = vperm.xlu1 %2906, %v1249_v7   ;;  %1392 = vperm.xlu0 %2905, %v1249_v7   ;;  %v1252_v17 = vld [vmem:[%s3849_s16 + $0x18] sm:$0xff]  ;;  %v1253_v20 = vld [vmem:[%s3849_s16 + $0x20] sm:$0xff]  ;;  %v1254_v22 = vld [vmem:[%s3849_s16 + $0x28] sm:$0xff]  ;;  %s3857_s25 = sld [smem:[#allocation16_spill]] }
  0x45   : > { %1398 = vperm.xlu2 %2907, %v1251_v10   ;;  %v1255_v24 = vld [vmem:[%s3849_s16 + $0x30] sm:$0xff]  ;;  %v1256_v26 = vld [vmem:[%s3849_s16 + $0x38] sm:$0xff]  ;;  %v1258_v28 = vld [vmem:[%s3849_s16 + $0x48] sm:$0xff]  ;;  %s3863_s20 = sld [smem:[#allocation37_spill]] }
  0x46   : > { %v2854_v29 = vld [vmem:[%s3168_s24] sm:$0xff]  ;;  %v1259_v31 = vld [vmem:[%s3849_s16 + $0x50] sm:$0xff]  ;;  %v1262_v32 = vld [vmem:[%s3849_s16 + $0x68] sm:$0xff] }
  0x47   : > { %1099 = vmatpush.bf16.msra.mxu3 %v2847_v8  ;;  %1146 = vmatpush.bf16.msra.mxu2 %v2851_v9  ;;  %v1257_v30 = vld [vmem:[%s3849_s16 + $0x40] sm:$0xff]  ;;  %v1260_v33 = vld [vmem:[%s3849_s16 + $0x58] sm:$0xff]  ;;  %v1263_v34 = vld [vmem:[%s3849_s16 + $0x70] sm:$0xff]  ;;  %s3853_s3 = scalar_lea.vmem %s3852_s12, %s3142_s0 }
  0x48   : > { %v1261_v35 = vld [vmem:[%s3849_s16 + $0x60] sm:$0xff]  ;;  %v1264_v36 = vld [vmem:[%s3849_s16 + $0x78] sm:$0xff]  ;;  %v3336_v40 = vld [vmem:[%s3851_s14 + $0x8] sm:$0xff] }
  0x49   : > { %v1661_v37 = vld [vmem:[%s3850_s21] sm:$0x3]  ;;  %v3350_v54 = vld [vmem:[%s3851_s14 + $0x10] sm:$0xff]  ;;  %v3372_v7 = vld [vmem:[%s3851_s14 + $0x18] sm:$0xff] }
  0x4a   : > { %v1729_v38 = vsel %vm1727_vm2, %v1661_v37, 0  ;;  %v3329_v39 = vld [vmem:[%s3851_s14] sm:$0xff] }
  0x4b   : > { %1100 = vmatpush.bf16.msra.mxu3 %v2846_v12  ;;  %1147 = vmatpush.bf16.msra.mxu2 %v2850_v13 }
  0x4c   : > { %1291 = vperm.xlu1 %2906, %v1250_v11   ;;  %1395 = vperm.xlu0 %2905, %v1250_v11  }
  0x4d   : > { %1401 = vperm.xlu2 %2907, %v1252_v17  }
  0x4e   : > { %2656 = vmatmul.msk.bf16.vlgmr.msra.gmra.mxu3 %vm1089_vm1, %v1056_v16  ;;  %2673 = vmatmul.msk.bf16.vlgmr.msra.gmra.mxu2 %vm1089_vm1, %v1056_v16 }
  0x4f   : > { %1238 = vmatpush.bf16.msrb.mxu3 %v2861_v15  ;;  %1191 = vmatpush.bf16.msrb.mxu2 %v2857_v23 }
  0x53   : > { %1239 = vmatpush.bf16.msrb.mxu3 %v2860_v18  ;;  %1192 = vmatpush.bf16.msrb.mxu2 %v2856_v25 }
  0x54   : > { %1297 = vperm.xlu1 %2906, %v1252_v17   ;;  %2908 = vset.pattern.permute.xlu0 %v2998_v3 }
  0x55   : > { %1294 = vperm.xlu0 %2908, %v1251_v10   ;;  %1404 = vperm.xlu2 %2907, %v1253_v20  }
  0x57   : > { %1240 = vmatpush.bf16.msrb.mxu3 %v2859_v19  ;;  %1193 = vmatpush.bf16.msrb.mxu2 %v2855_v27 }
  0x5b   : > { %1241 = vmatpush.bf16.msrb.mxu3 %v2858_v21  ;;  %1194 = vmatpush.bf16.msrb.mxu2 %v2854_v29  ;;  %v3394_v21 = vld [vmem:[%s3851_s14 + $0x20] sm:$0xff] }
  0x5c   : > { %2909 = vset.pattern.permute.xlu1 %v2999_v4 }
  0x5d   : > { %1407 = vperm.xlu1 %2909, %v1254_v22   ;;  %1303 = vperm.xlu0 %2908, %v1254_v22  }
  0x5e   : > { %2910 = vset.pattern.permute.xlu2 %v2998_v3  ;;  %2707 = vmatmul.msk.bf16.vlgmr.msrb.gmra.mxu3 %vm1089_vm1, %v1056_v16 }
  0x5f   : > { %1300 = vperm.xlu2 %2910, %v1253_v20   ;;  %2690 = vmatmul.msk.bf16.vlgmr.msrb.gmra.mxu2 %vm1089_vm1, %v1056_v16 }
  0x60   : > { %1738 = vmatpush.bf16.msra.mxu2 %v1729_v38 }
  0x65   : > { %1410 = vperm.xlu1 %2909, %v1255_v24   ;;  %1306 = vperm.xlu0 %2908, %v1255_v24  }
  0x67   : > { %2911 = vset.pattern.permute.xlu2 %v2999_v4 }
  0x68   : > { %1413 = vperm.xlu2 %2911, %v1256_v26  }
  0x6d   : > { %2912 = vset.pattern.permute.xlu1 %v2998_v3  ;;  %2913 = vset.pattern.permute.xlu0 %v2999_v4 }
  0x6e   : > { %1309 = vperm.xlu1 %2912, %v1256_v26   ;;  %1419 = vperm.xlu0 %2913, %v1258_v28  }
  0x6f   : > { %2790 = vmatmul.msk.bf16.vlgmr.msra.gmra.mxu2 %vm1702_vm3, %v3329_v39 }
  0x70   : > { %1416 = vperm.xlu2 %2911, %v1257_v30  }
  0x76   : > { %1312 = vperm.xlu1 %2912, %v1257_v30   ;;  %2917 = vset.pattern.permute.xlu0 %v2998_v3 }
  0x77   : > { %1318 = vperm.xlu0 %2917, %v1259_v31  }
  0x78   : > { %2914 = vset.pattern.permute.xlu2 %v2998_v3 }
  0x79   : > { %1315 = vperm.xlu2 %2914, %v1258_v28  }
  0x7e   : > { %2915 = vset.pattern.permute.xlu1 %v2999_v4 }
  0x7f   : > { %1422 = vperm.xlu1 %2915, %v1259_v31   ;;  %1327 = vperm.xlu0 %2917, %v1262_v32  }
  0x80   : > { %2791 = vmatmul.msk.bf16.gmra.mxu2 %vm1702_vm3, %v3336_v40 }
  0x81   : > { %2916 = vset.pattern.permute.xlu2 %v2999_v4 }
  0x82   : > { %1425 = vperm.xlu2 %2916, %v1260_v33  }
  0x87   : > { %2918 = vset.pattern.permute.xlu1 %v2998_v3  ;;  %1330 = vperm.xlu0 %2917, %v1263_v34  }
  0x88   : > { %1321 = vperm.xlu1 %2918, %v1260_v33  }
  0x8a   : > { %1428 = vperm.xlu2 %2916, %v1261_v35  }
  0x8f   : > { %2923 = vset.pattern.permute.xlu0 %v2999_v4 }
  0x90   : > { %2919 = vset.pattern.permute.xlu1 %v2999_v4  ;;  %2792 = vmatmul.msk.bf16.gmra.mxu2 %vm1702_vm3, %v3350_v54 }
  0x91   : > { %1431 = vperm.xlu1 %2919, %v1262_v32  }
  0x92   : > { %2920 = vset.pattern.permute.xlu2 %v2998_v3 }
  0x93   : > { %1324 = vperm.xlu2 %2920, %v1261_v35  }
  0x99   : > { %1434 = vperm.xlu1 %2919, %v1263_v34   ;;  %v3415_v34 = vld [vmem:[%s3851_s14 + $0x28] sm:$0xff] }
  0x9b   : > { %2921 = vset.pattern.permute.xlu2 %v2999_v4 }
  0x9c   : > { %1437 = vperm.xlu2 %2921, %v1264_v36  }
  0x9f   : > { %v1399_v51 = vpop.permute.xlu2 %1398 }
  0xa0   : > { %vm1441_vm12 = vcmp.eq.s32.totalorder %v3341_v48, %v1399_v51  ;;  %2793 = vmatmul.msk.bf16.gmra.mxu2 %vm1702_vm3, %v3372_v7 }
  0xa1   : > { %2922 = vset.pattern.permute.xlu1 %v2998_v3  ;;  %v2726_v12 = vsel %vm1441_vm12, 1.0, %v3000_v55 }
  0xa2   : > { %1333 = vperm.xlu1 %2922, %v1264_v36  }
  0xa7   : > { %v1402_v4 = vpop.permute.xlu2 %1401 }
  0xa8   : > { %vm1442_vm13 = vcmp.eq.s32.totalorder %v3341_v48, %v1402_v4 }
  0xa9   : > { %v2727_v13 = vsel %vm1442_vm13, 1.0, %v3000_v55 }
  0xaa   : > { %v1488_v17 = vpack.c.bf16 %v2727_v13, %v2726_v12 }
  0xaf   : > { %v1405_v15 = vpop.permute.xlu2 %1404 }
  0xb0   : > { %2794 = vmatmul.msk.bf16.gmra.mxu2 %vm1702_vm3, %v3394_v21 }
  0xb6   : > { %v1289_v41 = vpop.permute.xlu1 %1288  ;;  %v1393_v42 = vpop.permute.xlu0 %1392 }
  0xb7   : > { %vm1335_vm4 = vcmp.eq.s32.totalorder %v3341_v48, %v1289_v41  ;;  %vm1439_vm6 = vcmp.eq.s32.totalorder %v3341_v48, %v1393_v42 }
  0xb8   : > { %v2708_v56 = vsel %vm1335_vm4, 1.0, %v3000_v55  ;;  %v2724_v59 = vsel %vm1439_vm6, 1.0, %v3000_v55  ;;  %vm1443_vm4 = vcmp.eq.s32.totalorder %v3341_v48, %v1405_v15 }
  0xb9   : > { %v1301_v19 = vpop.permute.xlu2 %1300  ;;  %v2728_v26 = vsel %vm1443_vm4, 1.0, %v3000_v55 }
  0xba   : > { %vm1339_vm15 = vcmp.eq.s32.totalorder %v3341_v48, %v1301_v19 }
  0xbb   : > { %v2712_v24 = vsel %vm1339_vm15, 1.0, %v3000_v55 }
  0xbe   : > { %v1292_v49 = vpop.permute.xlu1 %1291  ;;  %v1396_v50 = vpop.permute.xlu0 %1395 }
  0xbf   : > { %vm1336_vm5 = vcmp.eq.s32.totalorder %v3341_v48, %v1292_v49  ;;  %vm1440_vm7 = vcmp.eq.s32.totalorder %v3341_v48, %v1396_v50  ;;  %v3436_v50 = vld [vmem:[%s3851_s14 + $0x30] sm:$0xff] }
  0xc0   : > { %v2709_v57 = vsel %vm1336_vm5, 1.0, %v3000_v55  ;;  %v2725_v60 = vsel %vm1440_vm7, 1.0, %v3000_v55  ;;  %2795 = vmatmul.msk.bf16.gmra.mxu2 %vm1702_vm3, %v3415_v34 }
  0xc1   : > { %v3360_v0 = vpack.c.bf16 %v2709_v57, %v2708_v56  ;;  %v1487_v1 = vpack.c.bf16 %v2725_v60, %v2724_v59 }
  0xc2   : > { %v1414_v30 = vpop.permute.xlu2 %1413 }
  0xc6   : > { %v1298_v5 = vpop.permute.xlu1 %1297 }
  0xc7   : > { %v1295_v6 = vpop.permute.xlu0 %1294  ;;  %vm1338_vm10 = vcmp.eq.s32.totalorder %v3341_v48, %v1298_v5 }
  0xc8   : > { %vm1337_vm11 = vcmp.eq.s32.totalorder %v3341_v48, %v1295_v6  ;;  %v2711_v9 = vsel %vm1338_vm10, 1.0, %v3000_v55  ;;  %vm1446_vm10 = vcmp.eq.s32.totalorder %v3341_v48, %v1414_v30  ;;  %v3462_v6 = vld [vmem:[%s3851_s14 + $0x38] sm:$0xff] }
  0xc9   : > { %v2710_v10 = vsel %vm1337_vm11, 1.0, %v3000_v55  ;;  %v2731_v42 = vsel %vm1446_vm10, 1.0, %v3000_v55 }
  0xca   : > { %v3381_v16 = vpack.c.bf16 %v2711_v9, %v2710_v10  ;;  %v1417_v38 = vpop.permute.xlu2 %1416 }
  0xcb   : > { %vm1447_vm13 = vcmp.eq.s32.totalorder %v3341_v48, %v1417_v38 }
  0xcc   : > { %v2732_v56 = vsel %vm1447_vm13, 1.0, %v3000_v55 }
  0xcf   : > { %v1408_v18 = vpop.permute.xlu1 %1407  ;;  %v1304_v20 = vpop.permute.xlu0 %1303 }
  0xd0   : > { %vm1340_vm14 = vcmp.eq.s32.totalorder %v3341_v48, %v1304_v20  ;;  %vm1444_vm0 = vcmp.eq.s32.totalorder %v3341_v48, %v1408_v18  ;;  %2796 = vmatmul.msk.bf16.gmra.mxu2 %vm1702_vm3, %v3436_v50 }
  0xd1   : > { %v1102_v44 = vpop.f32.mrf.mxu3  ;;  %v1149_v45 = vpop.f32.mrf.mxu2  ;;  %v2713_v23 = vsel %vm1340_vm14, 1.0, %v3000_v55  ;;  %v2729_v25 = vsel %vm1444_vm0, 1.0, %v3000_v55 }
  0xd2   : > { %v1106_v46 = vpack.c.bf16 %v1102_v44, %v1102_v44  ;;  %v1153_v47 = vpack.c.bf16 %v1149_v45, %v1149_v45  ;;  %v3402_v27 = vpack.c.bf16 %v2713_v23, %v2712_v24  ;;  %v1489_v28 = vpack.c.bf16 %v2729_v25, %v2728_v26 }
  0xd4   : > { %1107 = vst [vmem:[#allocation4] sm:$0xf] %v1106_v46 }
  0xd5   : > { %1154 = vst [vmem:[#allocation5] sm:$0xf] %v1153_v47  ;;  %v1316_v47 = vpop.permute.xlu2 %1315 }
  0xd6   : > { %vm1344_vm12 = vcmp.eq.s32.totalorder %v3341_v48, %v1316_v47 }
  0xd7   : > { %v1411_v22 = vpop.permute.xlu1 %1410  ;;  %v1307_v33 = vpop.permute.xlu0 %1306 }
  0xd8   : > { %vm1341_vm6 = vcmp.eq.s32.totalorder %v3341_v48, %v1307_v33  ;;  %vm1445_vm7 = vcmp.eq.s32.totalorder %v3341_v48, %v1411_v22 }
  0xd9   : > { %v1104_v52 = vpop.f32.mrf.mxu3  ;;  %v1151_v53 = vpop.f32.mrf.mxu2  ;;  %v2714_v37 = vsel %vm1341_vm6, 1.0, %v3000_v55  ;;  %v2730_v41 = vsel %vm1445_vm7, 1.0, %v3000_v55 }
  0xda   : > { %v1490_v45 = vpack.c.bf16 %v2731_v42, %v2730_v41  ;;  %v2717_v52 = vsel %vm1344_vm12, 1.0, %v3000_v55 }
  0xdb   : > { %v1505_v58 = vld [vmem:[#allocation4] sm:$0xf] }
  0xdc   : > { %v1506_v61 = vld [vmem:[#allocation5] sm:$0xf]  ;;  %v1610_v62 = vsel %vm1532_vm8, %v1505_v58, 0 }
  0xdd   : > { %v1534_v63 = vsel %vm1532_vm8, %v1506_v61, 0  ;;  %1619 = vmatpush.bf16.msra.mxu1 %v1610_v62  ;;  %v1426_v60 = vpop.permute.xlu2 %1425  ;;  %v1922_v62 = vld [vmem:[%s3178_s22] sm:$0x3] }
  0xde   : > { %1543 = vmatpush.bf16.msra.mxu0 %v1534_v63 }
  0xe0   : > { %2750 = vmatmul.msk.bf16.vlgmr.msra.gmra.mxu1 %vm1507_vm9, %v3360_v0  ;;  %v1310_v32 = vpop.permute.xlu1 %1309  ;;  %v1420_v49 = vpop.permute.xlu0 %1419  ;;  %2797 = vmatmul.msk.bf16.gmra.mxu2 %vm1702_vm3, %v3462_v6 }
  0xe1   : > { %2742 = vmatmul.msk.bf16.vlgmr.msra.gmra.mxu0 %vm1507_vm9, %v1487_v1  ;;  %v1243_v2 = vpop.f32.mrf.mxu3  ;;  %vm1342_vm5 = vcmp.eq.s32.totalorder %v3341_v48, %v1310_v32  ;;  %vm1448_vm14 = vcmp.eq.s32.totalorder %v3341_v48, %v1420_v49  ;;  %v3512_v49 = vld [vmem:[%s3853_s3] ss:$0 sm:$0xff] }
  0xe2   : > { %v1247_v3 = vpack.c.bf16 %v1243_v2, %v1243_v2  ;;  %v1196_v29 = vpop.f32.mrf.mxu2  ;;  %v2715_v36 = vsel %vm1342_vm5, 1.0, %v3000_v55  ;;  %v2733_v57 = vsel %vm1448_vm14, 1.0, %v3000_v55  ;;  %vm1450_vm5 = vcmp.eq.s32.totalorder %v3341_v48, %v1426_v60 }
  0xe3   : > { %v1200_v31 = vpack.c.bf16 %v1196_v29, %v1196_v29  ;;  %v3423_v44 = vpack.c.bf16 %v2715_v36, %v2714_v37  ;;  %v1491_v59 = vpack.c.bf16 %v2733_v57, %v2732_v56  ;;  %v2735_v10 = vsel %vm1450_vm5, 1.0, %v3000_v55 }
  0xe4   : > { %1248 = vst [vmem:[#allocation7] sm:$0xf] %v1247_v3 }
  0xe5   : > { %1201 = vst [vmem:[#allocation6] sm:$0xf] %v1200_v31 }
  0xe8   : > { %v1313_v46 = vpop.permute.xlu1 %1312 }
  0xe9   : > { %v1245_v8 = vpop.f32.mrf.mxu3  ;;  %vm1343_vm11 = vcmp.eq.s32.totalorder %v3341_v48, %v1313_v46  ;;  %v1319_v3 = vpop.permute.xlu0 %1318 }
  0xea   : > { %v1198_v35 = vpop.f32.mrf.mxu2  ;;  %v2716_v51 = vsel %vm1343_vm11, 1.0, %v3000_v55  ;;  %vm1345_vm0 = vcmp.eq.s32.totalorder %v3341_v48, %v1319_v3  ;;  %v1429_v8 = vpop.permute.xlu2 %1428 }
  0xeb   : > { %v1817_v11 = vld [vmem:[#allocation7] sm:$0xf]  ;;  %v3444_v58 = vpack.c.bf16 %v2717_v52, %v2716_v51  ;;  %v2718_v5 = vsel %vm1345_vm0, 1.0, %v3000_v55  ;;  %vm1451_vm7 = vcmp.eq.s32.totalorder %v3341_v48, %v1429_v8 }
  0xec   : > { %v1819_v14 = vsel %vm1532_vm8, %v1817_v11, 0  ;;  %v1816_v61 = vld [vmem:[#allocation6] sm:$0xf]  ;;  %v2736_v22 = vsel %vm1451_vm7, 1.0, %v3000_v55 }
  0xed   : > { %1828 = vmatpush.bf16.msra.mxu3 %v1819_v14  ;;  %v1871_v63 = vsel %vm1532_vm8, %v1816_v61, 0 }
  0xee   : > { %1880 = vmatpush.bf16.msrb.mxu0 %v1871_v63 }
  0xf0   : > { %2751 = vmatmul.msk.bf16.gmra.mxu1 %vm1507_vm9, %v3381_v16  ;;  %2798 = vmatmul.msk.bf16.vlgmr.msra.gmra.mxu3 %vm1507_vm9, %v1487_v1  ;;  %v1924_v1 = vsel %vm1727_vm2, %v1922_v62, 0 }
  0xf1   : > { %2743 = vmatmul.msk.bf16.gmra.mxu0 %vm1507_vm9, %v1488_v17  ;;  %v1423_v53 = vpop.permute.xlu1 %1422  ;;  %1933 = vmatpush.bf16.msrb.mxu1 %v1924_v1  ;;  %v1328_v15 = vpop.permute.xlu0 %1327 }
  0xf2   : > { %vm1449_vm4 = vcmp.eq.s32.totalorder %v3341_v48, %v1423_v53  ;;  %v1325_v14 = vpop.permute.xlu2 %1324  ;;  %vm1348_vm2 = vcmp.eq.s32.totalorder %v3341_v48, %v1328_v15  ;;  %v1740_v25 = vpop.f32.mrf.mxu2 }
  0xf3   : > { %v2734_v9 = vsel %vm1449_vm4, 1.0, %v3000_v55  ;;  %vm1347_vm8 = vcmp.eq.s32.totalorder %v3341_v48, %v1325_v14  ;;  %v2721_v18 = vsel %vm1348_vm2, 1.0, %v3000_v55 }
  0xf4   : > { %v1492_v12 = vpack.c.bf16 %v2735_v10, %v2734_v9  ;;  %v2720_v19 = vsel %vm1347_vm8, 1.0, %v3000_v55 }
  0xf5   : > { %v3482_v23 = vpack.c.bf16 %v2721_v18, %v2720_v19 }
  0xfa   : > { %v1322_v2 = vpop.permute.xlu1 %1321  ;;  %v1438_v29 = vpop.permute.xlu2 %1437 }
  0xfb   : > { %vm1346_vm15 = vcmp.eq.s32.totalorder %v3341_v48, %v1322_v2  ;;  %vm1454_vm13 = vcmp.eq.s32.totalorder %v3341_v48, %v1438_v29  ;;  %v1742_v30 = vpop.f32.mrf.mxu2 }
  0xfc   : > { %v2719_v4 = vsel %vm1346_vm15, 1.0, %v3000_v55  ;;  %v2739_v35 = vsel %vm1454_vm13, 1.0, %v3000_v55 }
  0xfd   : > { %v3466_v11 = vpack.c.bf16 %v2719_v4, %v2718_v5 }
 0x100   : > { %2752 = vmatmul.msk.bf16.gmra.mxu1 %vm1507_vm9, %v3402_v27  ;;  %2799 = vmatmul.msk.bf16.gmra.mxu3 %vm1507_vm9, %v1488_v17 }
 0x101   : > { %2744 = vmatmul.msk.bf16.gmra.mxu0 %vm1507_vm9, %v1489_v28 }
 0x103   : > { %v1432_v13 = vpop.permute.xlu1 %1431 }
 0x104   : > { %vm1452_vm6 = vcmp.eq.s32.totalorder %v3341_v48, %v1432_v13 }
 0x105   : > { %v2737_v20 = vsel %vm1452_vm6, 1.0, %v3000_v55 }
 0x106   : > { %v1493_v24 = vpack.c.bf16 %v2737_v20, %v2736_v22 }
 0x10b   : > { %v1435_v17 = vpop.permute.xlu1 %1434 }
 0x10c   : > { %vm1453_vm12 = vcmp.eq.s32.totalorder %v3341_v48, %v1435_v17 }
 0x10d   : > { %v2738_v33 = vsel %vm1453_vm12, 1.0, %v3000_v55 }
 0x10e   : > { %v1494_v37 = vpack.c.bf16 %v2739_v35, %v2738_v33 }
 0x110   : > { %2753 = vmatmul.msk.bf16.gmra.mxu1 %vm1507_vm9, %v3423_v44  ;;  %2800 = vmatmul.msk.bf16.gmra.mxu3 %vm1507_vm9, %v1489_v28  ;;  %v1331_v28 = vpop.permute.xlu0 %1330 }
 0x111   : > { %2745 = vmatmul.msk.bf16.gmra.mxu0 %vm1507_vm9, %v1490_v45  ;;  %vm1349_vm11 = vcmp.eq.s32.totalorder %v3341_v48, %v1331_v28 }
 0x112   : > { %v2722_v32 = vsel %vm1349_vm11, 1.0, %v3000_v55 }
 0x114   : > { %v1334_v26 = vpop.permute.xlu1 %1333 }
 0x115   : > { %vm1350_vm10 = vcmp.eq.s32.totalorder %v3341_v48, %v1334_v26  ;;  %v1745_v48 = vpop.f32.mrf.mxu2 }
 0x116   : > { %v2723_v31 = vsel %vm1350_vm10, 1.0, %v3000_v55 }
 0x117   : > { %v3496_v36 = vpack.c.bf16 %v2723_v31, %v2722_v32 }
 0x11d   : > { %v1747_v42 = vpop.f32.mrf.mxu2 }
 0x120   : > { %2754 = vmatmul.msk.bf16.gmra.mxu1 %vm1507_vm9, %v3444_v58  ;;  %2801 = vmatmul.msk.bf16.gmra.mxu3 %vm1507_vm9, %v1490_v45 }
 0x121   : > { %2746 = vmatmul.msk.bf16.gmra.mxu0 %vm1507_vm9, %v1491_v59 }
 0x125   : > { %v1750_v52 = vpop.f32.mrf.mxu2 }
 0x12d   : > { %v1752_v62 = vpop.f32.mrf.mxu2 }
 0x130   : > { %2755 = vmatmul.msk.bf16.gmra.mxu1 %vm1507_vm9, %v3466_v11  ;;  %2802 = vmatmul.msk.bf16.gmra.mxu3 %vm1507_vm9, %v1491_v59 }
 0x131   : > { %2747 = vmatmul.msk.bf16.gmra.mxu0 %vm1507_vm9, %v1492_v12 }
 0x135   : > { %v1755_v8 = vpop.f32.mrf.mxu2 }
 0x13d   : > { %v1757_v15 = vpop.f32.mrf.mxu2 }
 0x140   : > { %2756 = vmatmul.msk.bf16.gmra.mxu1 %vm1507_vm9, %v3482_v23  ;;  %2803 = vmatmul.msk.bf16.gmra.mxu3 %vm1507_vm9, %v1492_v12 }
 0x141   : > { %2748 = vmatmul.msk.bf16.gmra.mxu0 %vm1507_vm9, %v1493_v24 }
 0x150   : > { %2757 = vmatmul.msk.bf16.gmra.mxu1 %vm1507_vm9, %v3496_v36  ;;  %2804 = vmatmul.msk.bf16.gmra.mxu3 %vm1507_vm9, %v1493_v24 }
 0x151   : > { %2749 = vmatmul.msk.bf16.gmra.mxu0 %vm1507_vm9, %v1494_v37 }
 0x15d   : > { %v1621_v38 = vpop.f32.mrf.mxu1 }
 0x15e   : > { %v1545_v41 = vpop.f32.mrf.mxu0 }
 0x15f   : > { %v1622_v45 = vadd.f32 %v1621_v38, %v1545_v41 }
 0x160   : > { %2805 = vmatmul.msk.bf16.gmra.mxu3 %vm1507_vm9, %v1494_v37  ;;  %2814 = vmatmul.msk.bf16.vlgmr.msrb.gmra.mxu1 %vm1702_vm3, %v3329_v39 }
 0x161   : > { %v1780_v55 = vadd.f32 %v1740_v25, %v1622_v45  ;;  %2806 = vmatmul.msk.bf16.vlgmr.msrb.gmra.mxu0 %vm1507_vm9, %v3360_v0 }
 0x163   : > { %v3515_v56 = vadd.f32 %v3512_v49, %v1780_v55 }
 0x165   : > { %v1623_v46 = vpop.f32.mrf.mxu1 }
 0x166   : > { %v1547_v47 = vpop.f32.mrf.mxu0 }
 0x167   : > { %v1624_v51 = vadd.f32 %v1623_v46, %v1547_v47 }
 0x169   : > { %v1781_v53 = vadd.f32 %v1742_v30, %v1624_v51 }
 0x16b   : > { %v3518_v39 = vadd.f32 %v3512_v49, %v1781_v53 }
 0x16d   : > { %v1626_v57 = vpop.f32.mrf.mxu1  ;;  %v2012_v0 = vpack.c.bf16 %v3518_v39, %v3515_v56 }
 0x16e   : > { %v1550_v59 = vpop.f32.mrf.mxu0 }
 0x16f   : > { %v1627_v60 = vadd.f32 %v1626_v57, %v1550_v59 }
 0x170   : > { %2815 = vmatmul.msk.bf16.gmra.mxu1 %vm1702_vm3, %v3336_v40 }
 0x171   : > { %v1782_v61 = vadd.f32 %v1745_v48, %v1627_v60  ;;  %2807 = vmatmul.msk.bf16.gmra.mxu0 %vm1507_vm9, %v3381_v16 }
 0x173   : > { %v3527_v4 = vadd.f32 %v3512_v49, %v1782_v61  ;;  %v1830_v59 = vpop.f32.mrf.mxu3 }
 0x175   : > { %v1628_v63 = vpop.f32.mrf.mxu1 }
 0x176   : > { %v1552_v1 = vpop.f32.mrf.mxu0 }
 0x177   : > { %v1629_v2 = vadd.f32 %v1628_v63, %v1552_v1 }
 0x179   : > { %v1783_v3 = vadd.f32 %v1747_v42, %v1629_v2 }
 0x17b   : > { %v3530_v5 = vadd.f32 %v3512_v49, %v1783_v3 }
 0x17d   : > { %v1631_v9 = vpop.f32.mrf.mxu1  ;;  %v2013_v40 = vpack.c.bf16 %v3530_v5, %v3527_v4 }
 0x17e   : > { %v1555_v10 = vpop.f32.mrf.mxu0 }
 0x17f   : > { %v1632_v12 = vadd.f32 %v1631_v9, %v1555_v10 }
 0x180   : > { %2816 = vmatmul.msk.bf16.gmra.mxu1 %vm1702_vm3, %v3350_v54 }
 0x181   : > { %v1784_v16 = vadd.f32 %v1750_v52, %v1632_v12  ;;  %2808 = vmatmul.msk.bf16.gmra.mxu0 %vm1507_vm9, %v3402_v27  ;;  %v1760_v27 = vpop.f32.mrf.mxu2 }
 0x183   : > { %v3539_v19 = vadd.f32 %v3512_v49, %v1784_v16 }
 0x185   : > { %v1633_v13 = vpop.f32.mrf.mxu1 }
 0x186   : > { %v1557_v14 = vpop.f32.mrf.mxu0 }
 0x187   : > { %v1634_v17 = vadd.f32 %v1633_v13, %v1557_v14 }
 0x189   : > { %v1785_v18 = vadd.f32 %v1752_v62, %v1634_v17  ;;  %v1762_v32 = vpop.f32.mrf.mxu2  ;;  %v1832_v62 = vpop.f32.mrf.mxu3 }
 0x18b   : > { %v3542_v20 = vadd.f32 %v3512_v49, %v1785_v18 }
 0x18d   : > { %v1636_v22 = vpop.f32.mrf.mxu1  ;;  %v2014_v24 = vpack.c.bf16 %v3542_v20, %v3539_v19 }
 0x18e   : > { %v1560_v54 = vpop.f32.mrf.mxu0 }
 0x18f   : > { %v1637_v25 = vadd.f32 %v1636_v22, %v1560_v54 }
 0x190   : > { %2817 = vmatmul.msk.bf16.gmra.mxu1 %vm1702_vm3, %v3372_v7 }
 0x191   : > { %v1786_v26 = vadd.f32 %v1755_v8, %v1637_v25  ;;  %2809 = vmatmul.msk.bf16.gmra.mxu0 %vm1507_vm9, %v3423_v44  ;;  %v1765_v41 = vpop.f32.mrf.mxu2  ;;  %v1835_v2 = vpop.f32.mrf.mxu3 }
 0x193   : > { %v3551_v33 = vadd.f32 %v3512_v49, %v1786_v26 }
 0x195   : > { %v1638_v28 = vpop.f32.mrf.mxu1 }
 0x196   : > { %v1562_v29 = vpop.f32.mrf.mxu0 }
 0x197   : > { %v1639_v30 = vadd.f32 %v1638_v28, %v1562_v29 }
 0x199   : > { %v1787_v31 = vadd.f32 %v1757_v15, %v1639_v30  ;;  %v1767_v47 = vpop.f32.mrf.mxu2  ;;  %v1837_v26 = vpop.f32.mrf.mxu3 }
 0x19b   : > { %v3554_v35 = vadd.f32 %v3512_v49, %v1787_v31 }
 0x19d   : > { %v1641_v37 = vpop.f32.mrf.mxu1  ;;  %v2015_v7 = vpack.c.bf16 %v3554_v35, %v3551_v33 }
 0x19e   : > { %v1565_v48 = vpop.f32.mrf.mxu0 }
 0x19f   : > { %v1642_v38 = vadd.f32 %v1641_v37, %v1565_v48 }
 0x1a0   : > { %2818 = vmatmul.msk.bf16.gmra.mxu1 %vm1702_vm3, %v3394_v21 }
 0x1a1   : > { %v3560_v44 = vadd.f32 %v1760_v27, %v1642_v38  ;;  %2810 = vmatmul.msk.bf16.gmra.mxu0 %vm1507_vm9, %v3444_v58  ;;  %v1770_v21 = vpop.f32.mrf.mxu2 }
 0x1a5   : > { %v1643_v42 = vpop.f32.mrf.mxu1 }
 0x1a6   : > { %v1567_v45 = vpop.f32.mrf.mxu0 }
 0x1a7   : > { %v1644_v22 = vadd.f32 %v1643_v42, %v1567_v45 }
 0x1a9   : > { %v1772_v58 = vpop.f32.mrf.mxu2  ;;  %v1789_v37 = vadd.f32 %v1762_v32, %v1644_v22  ;;  %v3590_v32 = vld [vmem:[%s3854_s1] ss:$0 sm:$0xff]  ;;  %s2330_s1 = sshll.u32 %s3863_s20, 4  ;;  %s2331_s1 = int_to_ptr.hbm [resolvable:$true] %s2330_s1 }
 0x1ab   : > { %v1809_v45 = vadd.f32 %v3512_v49, %v1789_v37 }
 0x1ad   : > { %v1646_v55 = vpop.f32.mrf.mxu1 }
 0x1ae   : > { %v1570_v46 = vpop.f32.mrf.mxu0 }
 0x1af   : > { %v1647_v15 = vadd.f32 %v1646_v55, %v1570_v46 }
 0x1b0   : > { %2819 = vmatmul.msk.bf16.gmra.mxu1 %vm1702_vm3, %v3415_v34 }
 0x1b1   : > { %2811 = vmatmul.msk.bf16.gmra.mxu0 %vm1507_vm9, %v3466_v11  ;;  %v1775_v34 = vpop.f32.mrf.mxu2  ;;  %v1790_v29 = vadd.f32 %v1765_v41, %v1647_v15  ;;  %v1808_v41 = vadd.f32 %v3512_v49, %v3560_v44 }
 0x1b3   : > { %v1810_v42 = vadd.f32 %v3512_v49, %v1790_v29 }
 0x1b5   : > { %v1648_v51 = vpop.f32.mrf.mxu1 }
 0x1b6   : > { %v1572_v52 = vpop.f32.mrf.mxu0 }
 0x1b7   : > { %v1649_v16 = vadd.f32 %v1648_v51, %v1572_v52 }
 0x1b9   : > { %v1777_v9 = vpop.f32.mrf.mxu2 }
 0x1bd   : > { %v1651_v53 = vpop.f32.mrf.mxu1 }
 0x1be   : > { %v1575_v57 = vpop.f32.mrf.mxu0 }
 0x1c0   : > { %2820 = vmatmul.msk.bf16.gmra.mxu1 %vm1702_vm3, %v3436_v50 }
 0x1c1   : > { %2812 = vmatmul.msk.bf16.gmra.mxu0 %vm1507_vm9, %v3482_v23  ;;  %v1652_v23 = vadd.f32 %v1651_v53, %v1575_v57  ;;  %v2016_v57 = vpack.c.bf16 %v1809_v45, %v1808_v41 }
 0x1c3   : > { %v1792_v17 = vadd.f32 %v1770_v21, %v1652_v23  ;;  %v1840_v21 = vpop.f32.mrf.mxu3 }
 0x1c5   : > { %v1653_v60 = vpop.f32.mrf.mxu1  ;;  %v1812_v30 = vadd.f32 %v3512_v49, %v1792_v17 }
 0x1c6   : > { %v1577_v61 = vpop.f32.mrf.mxu0 }
 0x1c7   : > { %v1654_v3 = vadd.f32 %v1653_v60, %v1577_v61 }
 0x1c9   : > { %v1793_v13 = vadd.f32 %v1772_v58, %v1654_v3 }
 0x1cb   : > { %v1813_v54 = vadd.f32 %v3512_v49, %v1793_v13 }
 0x1cd   : > { %v1656_v63 = vpop.f32.mrf.mxu1  ;;  %v2018_v55 = vpack.c.bf16 %v1813_v54, %v1812_v30 }
 0x1ce   : > { %v1580_v1 = vpop.f32.mrf.mxu0 }
 0x1cf   : > { %v1657_v11 = vadd.f32 %v1656_v63, %v1580_v1 }
 0x1d0   : > { %2821 = vmatmul.msk.bf16.gmra.mxu1 %vm1702_vm3, %v3462_v6 }
 0x1d1   : > { %2813 = vmatmul.msk.bf16.gmra.mxu0 %vm1507_vm9, %v3496_v36  ;;  %v1794_v10 = vadd.f32 %v1775_v34, %v1657_v11  ;;  %v1791_v36 = vadd.f32 %v1767_v47, %v1649_v16  ;;  %v1842_v34 = vpop.f32.mrf.mxu3 }
 0x1d3   : > { %v1814_v18 = vadd.f32 %v3512_v49, %v1794_v10  ;;  %v1811_v48 = vadd.f32 %v3512_v49, %v1791_v36 }
 0x1d5   : > { %v1658_v50 = vpop.f32.mrf.mxu1  ;;  %v2017_v47 = vpack.c.bf16 %v1811_v48, %v1810_v42 }
 0x1d6   : > { %v1582_v8 = vpop.f32.mrf.mxu0 }
 0x1d7   : > { %v1659_v12 = vadd.f32 %v1658_v50, %v1582_v8 }
 0x1d9   : > { %v1795_v14 = vadd.f32 %v1777_v9, %v1659_v12  ;;  %v1845_v19 = vpop.f32.mrf.mxu3 }
 0x1db   : > { %v1815_v6 = vadd.f32 %v3512_v49, %v1795_v14 }
 0x1dd   : > { %v2019_v25 = vpack.c.bf16 %v1815_v6, %v1814_v18  ;;  %v1935_v27 = vpop.f32.mrf.mxu1 }
 0x1de   : > { %v1882_v28 = vpop.f32.mrf.mxu0 }
 0x1df   : > { %v1883_v31 = vadd.f32 %v1882_v28, %v1830_v59  ;;  %2041 = vmatpush.bf16.msrb.mxu3 %v2019_v25 }
 0x1e1   : > { %v1975_v38 = vadd.f32 %v1935_v27, %v1883_v31 }
 0x1e3   : > { %2042 = vmatpush.bf16.msrb.mxu3 %v2018_v55  ;;  %v3593_v59 = vadd.f32 %v3590_v32, %v1975_v38 }
 0x1e5   : > { %v1937_v46 = vpop.f32.mrf.mxu1 }
 0x1e6   : > { %v1884_v51 = vpop.f32.mrf.mxu0 }
 0x1e7   : > { %v1885_v52 = vadd.f32 %v1884_v51, %v1832_v62  ;;  %2043 = vmatpush.bf16.msrb.mxu3 %v2017_v47 }
 0x1e9   : > { %v1976_v53 = vadd.f32 %v1937_v46, %v1885_v52 }
 0x1eb   : > { %v3596_v58 = vadd.f32 %v3590_v32, %v1976_v53  ;;  %2044 = vmatpush.bf16.msrb.mxu3 %v2016_v57 }
 0x1ed   : > { %v1940_v60 = vpop.f32.mrf.mxu1  ;;  %v2020_v49 = vpack.c.bf16 %v3596_v58, %v3593_v59  ;;  %v2081_v59 = vld [vmem:[%s3194_s23 + $0x20] sm:$0xff]  ;;  %v2068_v58 = vld [vmem:[%s3189_s8 + $0x38] sm:$0xff] }
 0x1ee   : > { %v1887_v44 = vpop.f32.mrf.mxu0 }
 0x1ef   : > { %v1888_v61 = vadd.f32 %v1887_v44, %v1835_v2  ;;  %2045 = vmatpush.bf16.msrb.mxu3 %v2015_v7  ;;  %v2927_v44 = vld [vmem:[%s3855_s26 + $0x1] ss:$0 sm:$0xff] }
 0x1f1   : > { %v1977_v62 = vadd.f32 %v1940_v60, %v1888_v61  ;;  %v1286_v60 = vshrl.u32 %v1283_v43, 7 }
 0x1f3   : > { %2046 = vmatpush.bf16.msrb.mxu3 %v2014_v24  ;;  %v3610_v2 = vadd.f32 %v3590_v32, %v1977_v62  ;;  %vm1501_vm3 = vcmp.eq.s32.totalorder %v1286_v60, %v2927_v44  ;;  %v2167_v44 = vld [vmem:[%s3857_s25 + $0x70] sm:$0xff] }
 0x1f4   : > { %vm2824_vm9 = vmpackc.low %vm1501_vm3, %vm1501_vm3 }
 0x1f5   : > { %v1942_v63 = vpop.f32.mrf.mxu1 }
 0x1f6   : > { %v1889_v1 = vpop.f32.mrf.mxu0 }
 0x1f7   : > { %v1890_v11 = vadd.f32 %v1889_v1, %v1837_v26  ;;  %2047 = vmatpush.bf16.msrb.mxu3 %v2013_v40  ;;  %v1847_v40 = vpop.f32.mrf.mxu3  ;;  %v3001_v1 = vmov 1.0|1.0  }
 0x1f9   : > { %v1978_v3 = vadd.f32 %v1942_v63, %v1890_v11 }
 0x1fb   : > { %v3613_v33 = vadd.f32 %v3590_v32, %v1978_v3  ;;  %2048 = vmatpush.bf16.msrb.mxu3 %v2012_v0 }
 0x1fd   : > { %v1945_v20 = vpop.f32.mrf.mxu1  ;;  %v2021_v24 = vpack.c.bf16 %v3613_v33, %v3610_v2  ;;  %v2070_v2 = vld [vmem:[%s3189_s8 + $0x48] sm:$0xff] }
 0x1fe   : > { %v1892_v35 = vpop.f32.mrf.mxu0  ;;  %2825 = vmatmul.msk.bf16.vlgmr.msrb.gmra.mxu3 %vm2824_vm9, %v3001_v1  ;;  %v2082_v33 = vld [vmem:[%s3194_s23 + $0x28] sm:$0xff] }
 0x1ff   : > { %v1893_v7 = vadd.f32 %v1892_v35, %v1840_v21  ;;  %v1850_v16 = vpop.f32.mrf.mxu3 }
 0x201   : > { %v1979_v4 = vadd.f32 %v1945_v20, %v1893_v7 }
 0x203   : > { %v3621_v23 = vadd.f32 %v3590_v32, %v1979_v4 }
 0x205   : > { %v1947_v5 = vpop.f32.mrf.mxu1 }
 0x206   : > { %v1894_v50 = vpop.f32.mrf.mxu0 }
 0x207   : > { %v1895_v8 = vadd.f32 %v1894_v50, %v1842_v34  ;;  %v1852_v6 = vpop.f32.mrf.mxu3 }
 0x209   : > { %v1980_v9 = vadd.f32 %v1947_v5, %v1895_v8 }
 0x20b   : > { %v3624_v10 = vadd.f32 %v3590_v32, %v1980_v9 }
 0x20d   : > { %v1950_v56 = vpop.f32.mrf.mxu1  ;;  %v2022_v39 = vpack.c.bf16 %v3624_v10, %v3621_v23  ;;  %v2072_v23 = vld [vmem:[%s3189_s8 + $0x58] sm:$0xff] }
 0x20e   : > { %v1897_v0 = vpop.f32.mrf.mxu0  ;;  %v2084_v10 = vld [vmem:[%s3194_s23 + $0x38] sm:$0xff] }
 0x20f   : > { %v1898_v12 = vadd.f32 %v1897_v0, %v1845_v19  ;;  %v1855_v29 = vpop.f32.mrf.mxu3 }
 0x211   : > { %v1981_v13 = vadd.f32 %v1950_v56, %v1898_v12 }
 0x213   : > { %v3629_v22 = vadd.f32 %v3590_v32, %v1981_v13 }
 0x215   : > { %v1952_v14 = vpop.f32.mrf.mxu1 }
 0x216   : > { %v1899_v15 = vpop.f32.mrf.mxu0 }
 0x217   : > { %v1900_v17 = vadd.f32 %v1899_v15, %v1847_v40  ;;  %v1857_v48 = vpop.f32.mrf.mxu3 }
 0x219   : > { %v1982_v18 = vadd.f32 %v1952_v14, %v1900_v17 }
 0x21b   : > { %v2002_v36 = vadd.f32 %v3590_v32, %v1982_v18 }
 0x21d   : > { %v1955_v54 = vpop.f32.mrf.mxu1  ;;  %v2023_v25 = vpack.c.bf16 %v2002_v36, %v3629_v22 }
 0x21e   : > { %v1902_v27 = vpop.f32.mrf.mxu0 }
 0x21f   : > { %v1903_v26 = vadd.f32 %v1902_v27, %v1850_v16  ;;  %v1860_v45 = vpop.f32.mrf.mxu3  ;;  %v2075_v27 = vld [vmem:[%s3189_s8 + $0x70] sm:$0xff] }
 0x221   : > { %v1983_v28 = vadd.f32 %v1955_v54, %v1903_v26  ;;  %v2076_v54 = vld [vmem:[%s3189_s8 + $0x78] sm:$0xff]  ;;  %v2074_v26 = vld [vmem:[%s3189_s8 + $0x68] sm:$0xff] }
 0x222   : > { %2109 = vmatpush.msra.mxu3 %v2076_v54  ;;  %v2288_v54 = vld [vmem:[%s3226_s29 + $0x38] sm:$0xff] }
 0x223   : > { %v2003_v22 = vadd.f32 %v3590_v32, %v1983_v28  ;;  %v2073_v28 = vld [vmem:[%s3189_s8 + $0x60] sm:$0xff] }
 0x224   : > { %2110 = vmatpush.msra.mxu3 %v2075_v27  ;;  %v2287_v27 = vld [vmem:[%s3226_s29 + $0x30] sm:$0xff] }
 0x225   : > { %v1957_v30 = vpop.f32.mrf.mxu1 }
 0x226   : > { %v1904_v31 = vpop.f32.mrf.mxu0  ;;  %2111 = vmatpush.msra.mxu3 %v2074_v26  ;;  %v2286_v26 = vld [vmem:[%s3226_s29 + $0x28] sm:$0xff] }
 0x227   : > { %v1862_v51 = vpop.f32.mrf.mxu3  ;;  %v1905_v8 = vadd.f32 %v1904_v31, %v1852_v6  ;;  %v2066_v31 = vld [vmem:[%s3189_s8 + $0x28] sm:$0xff] }
 0x228   : > { %2112 = vmatpush.msra.mxu3 %v2073_v28  ;;  %v2243_v28 = vld [vmem:[%s3217_s13 + $0x10] sm:$0xff] }
 0x229   : > { %v1984_v13 = vadd.f32 %v1957_v30, %v1905_v8  ;;  %v2079_v30 = vld [vmem:[%s3194_s23 + $0x10] sm:$0xff]  ;;  %v2158_v8 = vld [vmem:[%s3857_s25 + $0x28] sm:$0xff] }
 0x22a   : > { %2113 = vmatpush.msra.mxu3 %v2072_v23  ;;  %v2242_v23 = vld [vmem:[%s3217_s13 + $0x8] sm:$0xff] }
 0x22b   : > { %v2004_v18 = vadd.f32 %v3590_v32, %v1984_v13  ;;  %v2248_v13 = vld [vmem:[%s3217_s13 + $0x38] sm:$0xff] }
 0x22d   : > { %v1960_v37 = vpop.f32.mrf.mxu1  ;;  %v2024_v36 = vpack.c.bf16 %v2004_v18, %v2003_v22  ;;  %v2246_v18 = vld [vmem:[%s3217_s13 + $0x28] sm:$0xff]  ;;  %v2153_v22 = vld [vmem:[%s3857_s25] sm:$0xff] }
 0x22e   : > { %v1907_v38 = vpop.f32.mrf.mxu0 }
 0x22f   : > { %v1865_v21 = vpop.f32.mrf.mxu3  ;;  %v1908_v43 = vadd.f32 %v1907_v38, %v1855_v29  ;;  %v2067_v29 = vld [vmem:[%s3189_s8 + $0x30] sm:$0xff]  ;;  %v2077_v38 = vld [vmem:[%s3194_s23] sm:$0xff] }
 0x231   : > { %v1985_v12 = vadd.f32 %v1960_v37, %v1908_v43  ;;  %v2078_v37 = vld [vmem:[%s3194_s23 + $0x8] sm:$0xff] }
 0x232   : > { %v2254_v43 = vld [vmem:[%s3217_s13 + $0x68] sm:$0xff] }
 0x233   : > { %v2005_v17 = vadd.f32 %v3590_v32, %v1985_v12  ;;  %v2249_v12 = vld [vmem:[%s3217_s13 + $0x40] sm:$0xff] }
 0x235   : > { %v1962_v55 = vpop.f32.mrf.mxu1 }
 0x236   : > { %v1909_v42 = vpop.f32.mrf.mxu0 }
 0x237   : > { %v1867_v34 = vpop.f32.mrf.mxu3  ;;  %v1910_v35 = vadd.f32 %v1909_v42, %v1857_v48  ;;  %v2065_v48 = vld [vmem:[%s3189_s8 + $0x20] sm:$0xff]  ;;  %v2064_v42 = vld [vmem:[%s3189_s8 + $0x18] sm:$0xff] }
 0x239   : > { %v1986_v9 = vadd.f32 %v1962_v55, %v1910_v35  ;;  %v2176_v55 = vld [vmem:[%s3856_s30 + $0x38] sm:$0xff]  ;;  %v2061_v35 = vld [vmem:[%s3189_s8] sm:$0xff] }
 0x23b   : > { %v2006_v14 = vadd.f32 %v3590_v32, %v1986_v9  ;;  %v2250_v9 = vld [vmem:[%s3217_s13 + $0x48] sm:$0xff] }
 0x23d   : > { %v1965_v46 = vpop.f32.mrf.mxu1  ;;  %v2025_v6 = vpack.c.bf16 %v2006_v14, %v2005_v17  ;;  %v2155_v14 = vld [vmem:[%s3857_s25 + $0x10] sm:$0xff]  ;;  %v2154_v17 = vld [vmem:[%s3857_s25 + $0x8] sm:$0xff] }
 0x23e   : > { %v1912_v47 = vpop.f32.mrf.mxu0 }
 0x23f   : > { %v1913_v11 = vadd.f32 %v1912_v47, %v1860_v45  ;;  %v2175_v45 = vld [vmem:[%s3856_s30 + $0x30] sm:$0xff]  ;;  %v3681_v47 = vld [vmem:[#allocation3] sm:$0xff] }
 0x241   : > { %v1987_v5 = vadd.f32 %v1965_v46, %v1913_v11  ;;  %v2063_v46 = vld [vmem:[%s3189_s8 + $0x10] sm:$0xff]  ;;  %v2161_v11 = vld [vmem:[%s3857_s25 + $0x40] sm:$0xff] }
 0x243   : > { %v2007_v16 = vadd.f32 %v3590_v32, %v1987_v5  ;;  %v2253_v5 = vld [vmem:[%s3217_s13 + $0x60] sm:$0xff] }
 0x245   : > { %v1967_v41 = vpop.f32.mrf.mxu1 }
 0x246   : > { %v1914_v52 = vpop.f32.mrf.mxu0 }
 0x247   : > { %v1915_v62 = vadd.f32 %v1914_v52, %v1862_v51  ;;  %v2174_v51 = vld [vmem:[%s3856_s30 + $0x28] sm:$0xff]  ;;  %v2172_v52 = vld [vmem:[%s3856_s30 + $0x18] sm:$0xff] }
 0x249   : > { %v1988_v7 = vadd.f32 %v1967_v41, %v1915_v62  ;;  %v2173_v41 = vld [vmem:[%s3856_s30 + $0x20] sm:$0xff] }
 0x24a   : > { %v2165_v62 = vld [vmem:[%s3857_s25 + $0x60] sm:$0xff] }
 0x24b   : > { %v2008_v56 = vadd.f32 %v3590_v32, %v1988_v7  ;;  %v2256_v7 = vld [vmem:[%s3217_s13 + $0x78] sm:$0xff] }
 0x24d   : > { %v1970_v57 = vpop.f32.mrf.mxu1  ;;  %v2026_v15 = vpack.c.bf16 %v2008_v56, %v2007_v16  ;;  %v2156_v16 = vld [vmem:[%s3857_s25 + $0x18] sm:$0xff] }
 0x24e   : > { %v1917_v53 = vpop.f32.mrf.mxu0 }
 0x24f   : > { %v1918_v61 = vadd.f32 %v1917_v53, %v1865_v21  ;;  %v2171_v21 = vld [vmem:[%s3856_s30 + $0x10] sm:$0xff]  ;;  %v2170_v53 = vld [vmem:[%s3856_s30 + $0x8] sm:$0xff] }
 0x251   : > { %v1989_v3 = vadd.f32 %v1970_v57, %v1918_v61  ;;  %v2169_v57 = vld [vmem:[%s3856_s30] sm:$0xff]  ;;  %v2166_v61 = vld [vmem:[%s3857_s25 + $0x68] sm:$0xff] }
 0x253   : > { %v2009_v40 = vadd.f32 %v3590_v32, %v1989_v3  ;;  %v2160_v3 = vld [vmem:[%s3857_s25 + $0x38] sm:$0xff] }
 0x255   : > { %v1972_v20 = vpop.f32.mrf.mxu1 }
 0x256   : > { %v1919_v63 = vpop.f32.mrf.mxu0 }
 0x257   : > { %v1920_v19 = vadd.f32 %v1919_v63, %v1867_v34  ;;  %v2164_v34 = vld [vmem:[%s3857_s25 + $0x58] sm:$0xff]  ;;  %v2163_v63 = vld [vmem:[%s3857_s25 + $0x50] sm:$0xff] }
 0x259   : > { %v1990_v4 = vadd.f32 %v1972_v20, %v1920_v19  ;;  %v2159_v19 = vld [vmem:[%s3857_s25 + $0x30] sm:$0xff]  ;;  %v2062_v20 = vld [vmem:[%s3189_s8 + $0x8] sm:$0xff] }
 0x25b   : > { %v2010_v50 = vadd.f32 %v3590_v32, %v1990_v4  ;;  %v2926_v32 = vld [vmem:[%s3855_s26] ss:$0 sm:$0xff]  ;;  %v2255_v4 = vld [vmem:[%s3217_s13 + $0x70] sm:$0xff] }
 0x25c   : > { %vm1496_vm14 = vcmp.eq.s32.totalorder %v1286_v60, %v2926_v32  ;;  %v2168_v60 = vld [vmem:[%s3857_s25 + $0x78] sm:$0xff] }
 0x25d   : > { %v2027_v0 = vpack.c.bf16 %v2010_v50, %v2009_v40  ;;  %vm2822_vm15 = vmpackc.low %vm1496_vm14, %vm1496_vm14  ;;  %v2252_v40 = vld [vmem:[%s3217_s13 + $0x58] sm:$0xff]  ;;  %v2251_v50 = vld [vmem:[%s3217_s13 + $0x50] sm:$0xff] }
 0x25e   : > { %v2244_v32 = vld [vmem:[%s3217_s13 + $0x18] sm:$0xff] }
 0x25f   : > { %2028 = vmatpush.bf16.msrb.mxu2 %v2027_v0  ;;  %v2157_v0 = vld [vmem:[%s3857_s25 + $0x20] sm:$0xff] }
 0x263   : > { %2029 = vmatpush.bf16.msrb.mxu2 %v2026_v15  ;;  %v2247_v15 = vld [vmem:[%s3217_s13 + $0x30] sm:$0xff] }
 0x267   : > { %2030 = vmatpush.bf16.msrb.mxu2 %v2025_v6 }
 0x26b   : > { %2031 = vmatpush.bf16.msrb.mxu2 %v2024_v36  ;;  %v2245_v36 = vld [vmem:[%s3217_s13 + $0x20] sm:$0xff] }
 0x26f   : > { %2032 = vmatpush.bf16.msrb.mxu2 %v2023_v25  ;;  %v2083_v25 = vld [vmem:[%s3194_s23 + $0x30] sm:$0xff] }
 0x273   : > { %2033 = vmatpush.bf16.msrb.mxu2 %v2022_v39  ;;  %v2071_v39 = vld [vmem:[%s3189_s8 + $0x50] sm:$0xff] }
 0x274   : > { %2114 = vmatpush.msra.mxu3 %v2071_v39  ;;  %v2284_v39 = vld [vmem:[%s3226_s29 + $0x18] sm:$0xff] }
 0x276   : > { %2115 = vmatpush.msra.mxu3 %v2070_v2  ;;  %v2283_v2 = vld [vmem:[%s3226_s29 + $0x10] sm:$0xff] }
 0x277   : > { %2034 = vmatpush.bf16.msrb.mxu2 %v2021_v24  ;;  %v2069_v24 = vld [vmem:[%s3189_s8 + $0x40] sm:$0xff] }
 0x278   : > { %2116 = vmatpush.msra.mxu3 %v2069_v24  ;;  %v2281_v24 = vld [vmem:[%s3226_s29] sm:$0xff] }
 0x27a   : > { %2117 = vmatpush.msra.mxu3 %v2068_v58 }
 0x27b   : > { %2035 = vmatpush.bf16.msrb.mxu2 %v2020_v49  ;;  %v2080_v49 = vld [vmem:[%s3194_s23 + $0x18] sm:$0xff]  ;;  %s3858_s23 = sld [smem:[#allocation31_spill]] }
 0x27c   : > { %2118 = vmatpush.msra.mxu3 %v2067_v29 }
 0x27e   : > { %2823 = vmatmul.msk.bf16.vlgmr.msrb.gmra.mxu2 %vm2822_vm15, %v3001_v1  ;;  %2119 = vmatpush.msra.mxu3 %v2066_v31  ;;  %v2162_v1 = vld [vmem:[%s3857_s25 + $0x48] sm:$0xff] }
 0x27f   : > { %2097 = vmatpush.msra.mxu2 %v2084_v10  ;;  %v2285_v10 = vld [vmem:[%s3226_s29 + $0x20] sm:$0xff] }
 0x280   : > { %2120 = vmatpush.msra.mxu3 %v2065_v48 }
 0x281   : > { %2098 = vmatpush.msra.mxu2 %v2083_v25  ;;  %v2050_v56 = vpop.f32.mrf.mxu3  ;;  %v2241_v25 = vld [vmem:[%s3217_s13] sm:$0xff]  ;;  %s3859_s21 = scalar_lea.vmem %s3858_s23, %s3142_s0  ;;  %s3002_s0 = smov [#allocation8]  }
 0x282   : > { %2121 = vmatpush.msra.mxu3 %v2064_v42  ;;  %v2928_v31 = vld [vmem:[%s3859_s21] ss:$0 sm:$0xff] }
 0x283   : > { %2099 = vmatpush.msra.mxu2 %v2082_v33  ;;  %v2282_v33 = vld [vmem:[%s3226_s29 + $0x8] sm:$0xff] }
 0x284   : > { %2122 = vmatpush.msra.mxu3 %v2063_v46 }
 0x285   : > { %2100 = vmatpush.msra.mxu2 %v2081_v59 }
 0x286   : > { %2123 = vmatpush.msra.mxu3 %v2062_v20 }
 0x287   : > { %2101 = vmatpush.msra.mxu2 %v2080_v49 }
 0x288   : > { %2124 = vmatpush.msra.mxu3 %v2061_v35 }
 0x289   : > { %2102 = vmatpush.msra.mxu2 %v2079_v30  ;;  %v2052_v6 = vpop.f32.mrf.mxu3 }
 0x28a   : > { %2261 = vmatpush.msrb.mxu3 %v2256_v7 }
 0x28b   : > { %2103 = vmatpush.msra.mxu2 %v2078_v37  ;;  %v2929_v37 = vld [vmem:[%s1024_s7] ss:$0 sm:$0xff] }
 0x28c   : > { %2262 = vmatpush.msrb.mxu3 %v2255_v4 }
 0x28d   : > { %2104 = vmatpush.msra.mxu2 %v2077_v38 }
 0x28e   : > { %2826 = vmatmul.msk.f32.vlgmr.msra.gmra.mxu2 %vm1089_vm1, %v3681_v47  ;;  %2263 = vmatpush.msrb.mxu3 %v2254_v43  ;;  %v2931_v43 = vld [vmem:[%s1032_s9] ss:$0 sm:$0xff]  ;;  %s2328_s9 = sshll.u32 %s3002_s0, 4  ;;  %s2329_s9 = int_to_ptr.vmem [resolvable:$true] %s2328_s9 }
 0x28f   : > { %2185 = vmatpush.msrb.mxu2 %v2176_v55 }
 0x290   : > { %2264 = vmatpush.msrb.mxu3 %v2253_v5 }
 0x291   : > { %2186 = vmatpush.msrb.mxu2 %v2175_v45 }
 0x292   : > { %2265 = vmatpush.msrb.mxu3 %v2252_v40 }
 0x293   : > { %2187 = vmatpush.msrb.mxu2 %v2174_v51 }
 0x294   : > { %2266 = vmatpush.msrb.mxu3 %v2251_v50 }
 0x295   : > { %2188 = vmatpush.msrb.mxu2 %v2173_v41 }
 0x296   : > { %2267 = vmatpush.msrb.mxu3 %v2250_v9 }
 0x297   : > { %2189 = vmatpush.msrb.mxu2 %v2172_v52 }
 0x298   : > { %2268 = vmatpush.msrb.mxu3 %v2249_v12 }
 0x299   : > { %2190 = vmatpush.msrb.mxu2 %v2171_v21 }
 0x29a   : > { %2269 = vmatpush.msrb.mxu3 %v2248_v13 }
 0x29b   : > { %2191 = vmatpush.msrb.mxu2 %v2170_v53 }
 0x29c   : > { %2270 = vmatpush.msrb.mxu3 %v2247_v15 }
 0x29d   : > { %2192 = vmatpush.msrb.mxu2 %v2169_v57 }
 0x29e   : > { %2828 = vmatmul.msk.f32.vlgmr.msrb.gmra.mxu2 %vm1089_vm1, %v3681_v47  ;;  %2271 = vmatpush.msrb.mxu3 %v2246_v18 }
 0x29f   : > { %2197 = vmatpush.msra.mxu2 %v2168_v60 }
 0x2a0   : > { %2272 = vmatpush.msrb.mxu3 %v2245_v36 }
 0x2a1   : > { %2198 = vmatpush.msra.mxu2 %v2167_v44 }
 0x2a2   : > { %2273 = vmatpush.msrb.mxu3 %v2244_v32 }
 0x2a3   : > { %2199 = vmatpush.msra.mxu2 %v2166_v61 }
 0x2a4   : > { %2274 = vmatpush.msrb.mxu3 %v2243_v28 }
 0x2a5   : > { %2200 = vmatpush.msra.mxu2 %v2165_v62 }
 0x2a6   : > { %2275 = vmatpush.msrb.mxu3 %v2242_v23 }
 0x2a7   : > { %2201 = vmatpush.msra.mxu2 %v2164_v34 }
 0x2a8   : > { %2276 = vmatpush.msrb.mxu3 %v2241_v25 }
 0x2a9   : > { %2202 = vmatpush.msra.mxu2 %v2163_v63  ;;  %v2930_v63 = vld [vmem:[%s1040_s19] ss:$0 sm:$0xff]  ;;  %s3862_s19 = sld [smem:[#allocation13_spill]] }
 0x2ab   : > { %2203 = vmatpush.msra.mxu2 %v2162_v1 }
 0x2ad   : > { %2204 = vmatpush.msra.mxu2 %v2161_v11 }
 0x2af   : > { %2205 = vmatpush.msra.mxu2 %v2160_v3  ;;  %s3864_s6 = sadd.s32 4294967295, %s3862_s19  }
 0x2b0   : > { %p2874_p6 = scmp.eq.s32.totalorder %s3864_s6, 2 }
 0x2b1   : > { %2206 = vmatpush.msra.mxu2 %v2159_v19 }
 0x2b3   : > { %2207 = vmatpush.msra.mxu2 %v2158_v8 }
 0x2b5   : > { %2208 = vmatpush.msra.mxu2 %v2157_v0 }
 0x2b7   : > { %2209 = vmatpush.msra.mxu2 %v2156_v16 }
 0x2b9   : > { %2210 = vmatpush.msra.mxu2 %v2155_v14 }
 0x2bb   : > { %2211 = vmatpush.msra.mxu2 %v2154_v17 }
 0x2bd   : > { %2212 = vmatpush.msra.mxu2 %v2153_v22 }
 0x2bf   : > { %2301 = vmatpush.msrb.mxu2 %v2288_v54 }
 0x2c1   : > { %2302 = vmatpush.msrb.mxu2 %v2287_v27 }
 0x2c3   : > { %2303 = vmatpush.msrb.mxu2 %v2286_v26 }
 0x2c5   : > { %2304 = vmatpush.msrb.mxu2 %v2285_v10 }
 0x2c7   : > { %2305 = vmatpush.msrb.mxu2 %v2284_v39 }
 0x2c9   : > { %2306 = vmatpush.msrb.mxu2 %v2283_v2 }
 0x2cb   : > { %2307 = vmatpush.msrb.mxu2 %v2282_v33 }
 0x2cd   : > { %2308 = vmatpush.msrb.mxu2 %v2281_v24 }
 0x301   : > { %v2037_v59 = vpop.f32.mrf.mxu2 }
 0x302   : > { %v2051_v58 = vadd.f32 %v2050_v56, %v2037_v59 }
 0x304   : > { %2125 = vmatmul.f32.vlgmr.msra.gmra.mxu3 %v2051_v58  ;;  %2213 = vmatmul.f32.vlgmr.msra.gmra.mxu2 %v2051_v58 }
 0x309   : > { %v2039_v49 = vpop.f32.mrf.mxu2 }
 0x30c   : > { %2830 = vmatmul.msk.f32.vlgmr.msrb.gmra.mxu2 %vm1089_vm1, %v3681_v47  ;;  %2277 = vmatmul.f32.vlgmr.msrb.gmra.mxu3 %v2051_v58 }
 0x311   : > { %v2106_v29 = vpop.f32.mrf.mxu2 }
 0x321   : > { %v2194_v30 = vpop.f32.mrf.mxu2 }
 0x387   : > { %v2126_v48 = vpop.f32.mrf.mxu3  ;;  %v2214_v38 = vpop.f32.mrf.mxu2 }
 0x388   : > { %v2127_v55 = vadd.f32 %v2126_v48, %v2106_v29  ;;  %v2215_v42 = vadd.f32 %v2214_v38, %v2194_v30 }
 0x38a   : > { %v2133_v45 = vadd.f32 %v2928_v31, %v2127_v55  ;;  %v2221_v46 = vadd.f32 %v2929_v37, %v2215_v42 }
 0x38c   : > { %v2827_v51 = vmul.f32 -1.442695, %v2133_v45  ;;  %v2829_v41 = vmul.f32 -1.442695, %v2221_v46 }
 0x38e   : > { %2932 = vpow2.f32 %v2827_v51 }
 0x38f   : > { %2934 = vpow2.f32 %v2829_v41  ;;  %v2310_v3 = vpop.f32.mrf.mxu2  ;;  %v2278_v40 = vpop.f32.mrf.mxu3 }
 0x390   : > { %v2311_v4 = vadd.f32 %v2930_v63, %v2310_v3  ;;  %v2279_v0 = vadd.f32 %v2931_v43, %v2278_v40 }
 0x394   : > { %v2933_v52 = vpop.eup %2932 }
 0x395   : > { %v2935_v21 = vpop.eup %2934  ;;  %v2137_v53 = vadd.f32 1.0, %v2933_v52 }
 0x396   : > { %v2225_v57 = vadd.f32 1.0, %v2935_v21 }
 0x397   : > { %2936 = vrcp.f32 %v2137_v53  ;;  %v2149_v11 = vand.u32 2147483648, %v2137_v53  ;;  %v2147_v20 = vand.u32 2147483647, %v2137_v53  ;;  %vm2143_vm4 = vweird.f32 %v2137_v53 }
 0x398   : > { %2938 = vrcp.f32 %v2225_v57  ;;  %v2237_v12 = vand.u32 2147483648, %v2225_v57  ;;  %vm2231_vm6 = vweird.f32 %v2225_v57  ;;  %v2235_v16 = vand.u32 2147483647, %v2225_v57 }
 0x399   : > { %v2150_v5 = vor.u32 1.1754944e-38, %v2149_v11  ;;  %vm2148_vm2 = vcmp.eq.f32.partialorder %v2147_v20, 8.507059e+37 }
 0x39a   : > { %v2238_v15 = vor.u32 1.1754944e-38, %v2237_v12  ;;  %vm2236_vm10 = vcmp.eq.f32.partialorder %v2235_v16, 8.507059e+37 }
 0x39d   : > { %v2937_v60 = vpop.eup %2936 }
 0x39e   : > { %v2939_v44 = vpop.eup %2938  ;;  %v2139_v61 = vmul.f32 %v2937_v60, %v2137_v53  ;;  %vm2144_vm0 = vweird.f32 %v2937_v60 }
 0x39f   : > { %v2227_v62 = vmul.f32 %v2939_v44, %v2225_v57  ;;  %vm2145_vm5 = vmor %vm2143_vm4, %vm2144_vm0  ;;  %vm2232_vm8 = vweird.f32 %v2939_v44 }
 0x3a0   : > { %v2140_v34 = vsub.f32 1.0, %v2139_v61  ;;  %vm2233_vm7 = vmor %vm2231_vm6, %vm2232_vm8 }
 0x3a1   : > { %v2228_v1 = vsub.f32 1.0, %v2227_v62 }
 0x3a2   : > { %v2141_v19 = vmul.f32 %v2937_v60, %v2140_v34 }
 0x3a3   : > { %v2229_v35 = vmul.f32 %v2939_v44, %v2228_v1 }
 0x3a4   : > { %v2142_v7 = vadd.f32 %v2937_v60, %v2141_v19 }
 0x3a5   : > { %v2230_v9 = vadd.f32 %v2939_v44, %v2229_v35 }
 0x3a6   : > { %v2146_v50 = vsel %vm2145_vm5, %v2937_v60, %v2142_v7 }
 0x3a7   : > { %v2151_v8 = vsel %vm2148_vm2, %v2150_v5, %v2146_v50  ;;  %v2234_v14 = vsel %vm2233_vm7, %v2939_v44, %v2230_v9 }
 0x3a8   : > { %v2313_v56 = vmul.f32 %v2311_v4, %v2151_v8  ;;  %v2239_v17 = vsel %vm2236_vm10, %v2238_v15, %v2234_v14 }
 0x3a9   : > { %v2316_v18 = vsub.f32 1.0, %v2239_v17  ;;  %v2318_v36 = vmul.f32 %v2239_v17, %v3681_v47 }
 0x3aa   : > { %v2314_v13 = vadd.f32 %v2313_v56, %v2279_v0 }
 0x3ac   : > { %2940 = vtanh.f32 %v2314_v13 }
 0x3b2   : > { %v2941_v6 = vpop.eup %2940 }
 0x3b3   : > { %v2317_v22 = vmul.f32 %v2941_v6, %v2316_v18 }
 0x3b5   : > { %v2319_v54 = vadd.f32 %v2318_v36, %v2317_v22 }
 0x3b7   : > { %2320 = vst.msk [vmem:[#allocation3] sm:$0xff] %vm1089_vm1, %v2319_v54 }
 0x3b8   : > { %2321 = vst.msk [vmem:[#allocation8] sm:$0xff] %vm1089_vm1, %v2319_v54 }
 0x3b9   : > { %2871 = dma.vmem_to_hbm [thread:$0]  (%p2874_p6), %s2329_s9, 128, %s2331_s1, [#allocation9]  }
 0x3ba   : > { %2983 = dma.done.wait (%p2874_p6), [#allocation9], 128  }
 0x3bb   : > { %2985 = vsyncadd (%p2874_p6), [#allocation9], 4294967168 }
 0x3bc PF: > { %s3865_s24 = sld [smem:[#allocation13_spill]] }
 0x3bd   : > { %s3866_s3 = sld [smem:[#allocation12_spill]] }
 0x3be   : > { %s3867_s28 = sld [smem:[#allocation14_spill]] }
 0x3c2   : > { %s33_s29 = sadd.s32 1, %s3865_s24  }
 0x3c3   : > { %p30_p7 = scmp.ge.s32.totalorder %s33_s29, 5  }
 0x3c5   :  { %32 = sbr.rel (!%p30_p7) target bundleno = 23 (0x17), region = 207 }
 0x3ca   :  { %2344 = vsyncpa [#allocation9], 1 }
 0x3cb   :  { %2346 = vsyncpa [#allocation9 + $0x1], 1 }

</bundles_post_ra>
